<compile_context>
chip_gen: v6e
topology: v6e:2x2x1
jax: 0.10.0
libtpu: 0.0.40
codegen_flags: <defaults>
</compile_context>

<pallas_src>
import functools

import jax
import jax.numpy as jnp
import numpy as np
from jax.experimental import pallas as pl
from jax.experimental.pallas import tpu as pltpu

# Make the pure-JAX reference use full f32 matmul precision so the numerical
# check against the (f32-accumulating) Pallas kernel is tight.
jax.config.update("jax_default_matmul_precision", "highest")


# ----------------------------------------------------------------------------
# Config (mirrors the fields used by the PyTorch module)
# ----------------------------------------------------------------------------
class Config:
    d_hidden = 32
    n_head = 4
    d_head = 8
    dropout = 0.0


# ----------------------------------------------------------------------------
# Fused MHA kernel: one invocation == the whole batch (all heads, all batch)
# ----------------------------------------------------------------------------
def _mha_kernel(q_ref, k_ref, v_ref, mask_ref,
                wqkv_ref, bqkv_ref, wout_ref, bout_ref,
                out_ref, *prob_refs, n_head, d_head):
    """q/k/v refs: [B*S, D]; mask: [B, S, S] int8; out: [B*S, D];
    optional prob ref: [B, H, S, S]. All refs live in VMEM."""
    prob_ref = prob_refs[0] if prob_refs else None

    B, S, _ = mask_ref.shape
    hd = n_head * d_head
    D = out_ref.shape[-1]

    wqkv = wqkv_ref[...]               # [D, 3*HD], already [in, out]; Q cols pre-scaled
    bqkv = bqkv_ref[...]               # [1, 3*HD]

    # Fused QKV projections over the stacked batch: [B*S, D] @ [D, HD].
    # One MXU pass per projection instead of per-batch-element pushes.
    # The 1/sqrt(d_head) scale is already folded into the Q weight/bias.
    q_p = jnp.dot(q_ref[...], wqkv[:, 0 * hd:1 * hd],
                  preferred_element_type=jnp.float32) + bqkv[:, 0 * hd:1 * hd]
    k_p = jnp.dot(k_ref[...], wqkv[:, 1 * hd:2 * hd],
                  preferred_element_type=jnp.float32) + bqkv[:, 1 * hd:2 * hd]
    v_p = jnp.dot(v_ref[...], wqkv[:, 2 * hd:3 * hd],
                  preferred_element_type=jnp.float32) + bqkv[:, 2 * hd:3 * hd]

    # [B*S, HD] -> [B, S, HD]: splits only the sublane dim (S == one 8-row
    # sublane tile at these shapes); no lane relayout.
    q3 = q_p.reshape(B, S, hd)
    k3 = k_p.reshape(B, S, hd)
    v3 = v_p.reshape(B, S, hd)

    masked = mask_ref[...] != 0        # int8 compared directly, no widening pass

    # Per-head attention with a running f32 accumulator for the output
    # projection (no concatenate -> no XLU relayout; O(1) live tiles per head).
    # Static unroll: n_head is small and fixed.  (Switch to lax.fori_loop if
    # H grows, to bound live ranges.)
    out_acc = jnp.zeros((B * S, D), jnp.float32)
    for h in range(n_head):
        lo = h * d_head
        qh = q3[:, :, lo:lo + d_head]                              # [B, S, d_head]
        kh = k3[:, :, lo:lo + d_head]
        vh = v3[:, :, lo:lo + d_head]

        score = jnp.einsum("bqd,bkd->bqk", qh, kh,
                           preferred_element_type=jnp.float32)     # [B, S, S]
        score = jnp.where(masked, jnp.float32(-1e9), score)

        # Numerically stable softmax; the divide becomes an EUP reciprocal
        # (separate VLIW slot -> near free) + a VPU multiply.
        m = jnp.max(score, axis=-1, keepdims=True)
        e = jnp.exp(score - m)
        denom = jnp.sum(e, axis=-1, keepdims=True)
        prob = e * pl.reciprocal(denom, approx=True)

        if prob_ref is not None:
            prob_ref[:, h, :, :] = prob

        ctx = jnp.einsum("bqk,bkd->bqd", prob, vh,
                         preferred_element_type=jnp.float32)       # [B, S, d_head]
        out_acc = out_acc + jnp.dot(ctx.reshape(B * S, d_head),
                                    wout_ref[lo:lo + d_head, :],
                                    preferred_element_type=jnp.float32)

    out_ref[...] = out_acc + bout_ref[...]            # [1, D] broadcasts over rows


# ----------------------------------------------------------------------------
# Wrapper: one pallas_call, no grid, everything resident in VMEM
# ----------------------------------------------------------------------------
def multi_head_attention(params, Q, K, V, attn_mask, cfg, *, return_attn_prob=True):
    """Q/K/V: [B, S, d_hidden]; attn_mask: [B, S, S] (True/nonzero = masked)."""
    B, S, D = Q.shape
    H, Dh = cfg.n_head, cfg.d_head

    # Free, contiguous reshapes: stack the batch into the MXU M dimension.
    q2 = Q.reshape(B * S, D)
    k2 = K.reshape(B * S, D)
    v2 = V.reshape(B * S, D)
    # "!= 0" first so integer masks can never wrap to 0 under int8 narrowing.
    mask_i8 = (attn_mask != 0).astype(jnp.int8)

    out_shapes = [jax.ShapeDtypeStruct((B * S, D), jnp.float32)]
    if return_attn_prob:
        out_shapes.append(jax.ShapeDtypeStruct((B, H, S, S), jnp.float32))

    vmem = pl.BlockSpec(memory_space=pltpu.MemorySpace.VMEM)
    kernel = functools.partial(_mha_kernel, n_head=H, d_head=Dh)

    results = pl.pallas_call(
        kernel,
        out_shape=tuple(out_shapes),
        # No grid: the whole working set fits trivially in VMEM, so a single
        # invocation avoids all per-grid-step pipeline overhead.
        in_specs=[vmem] * 8,
        out_specs=tuple([vmem] * len(out_shapes)),
        compiler_params=pltpu.CompilerParams(
            vmem_limit_bytes=32 * 1024 * 1024,
        ),
    )(q2, k2, v2, mask_i8,
      params["w_qkv"], params["b_qkv"], params["w_out"], params["b_out"])

    output = results[0].reshape(B, S, D)
    attn_prob = results[1] if return_attn_prob else None
    return output, attn_prob


# ----------------------------------------------------------------------------
# Parameters: raw (PyTorch nn.Linear convention) + one-time kernel prep
# ----------------------------------------------------------------------------
def init_params(key, cfg):
    """Raw params in PyTorch convention: weight [out, in], bias [out]."""
    d_h = cfg.d_hidden
    d_proj = cfg.n_head * cfg.d_head
    keys = jax.random.split(key, 8)
    scale = 0.1
    return {
        "W_Q_w": scale * jax.random.normal(keys[0], (d_proj, d_h), jnp.float32),
        "W_Q_b": scale * jax.random.normal(keys[1], (d_proj,), jnp.float32),
        "W_K_w": scale * jax.random.normal(keys[2], (d_proj, d_h), jnp.float32),
        "W_K_b": scale * jax.random.normal(keys[3], (d_proj,), jnp.float32),
        "W_V_w": scale * jax.random.normal(keys[4], (d_proj, d_h), jnp.float32),
        "W_V_b": scale * jax.random.normal(keys[5], (d_proj,), jnp.float32),
        "out_w": scale * jax.random.normal(keys[6], (d_h, d_proj), jnp.float32),
        "out_b": scale * jax.random.normal(keys[7], (d_h,), jnp.float32),
    }


def prepare_params(raw, cfg):
    """Pre-transpose + fuse weights ONCE so the kernel sees [in, out] layouts.
    The 1/sqrt(d_head) attention scale is folded into the Q columns here."""
    d_h = cfg.d_hidden
    d_proj = cfg.n_head * cfg.d_head
    scaler = 1.0 / (cfg.d_head ** 0.5)
    w_qkv = jnp.concatenate(
        [raw["W_Q_w"].T * scaler, raw["W_K_w"].T, raw["W_V_w"].T], axis=1)   # [D, 3*HD]
    b_qkv = jnp.concatenate(
        [raw["W_Q_b"] * scaler, raw["W_K_b"], raw["W_V_b"]]).reshape(1, 3 * d_proj)
    return {
        "w_qkv": w_qkv,
        "b_qkv": b_qkv,
        "w_out": raw["out_w"].T,                                             # [HD, D]
        "b_out": raw["out_b"].reshape(1, d_h),
    }


# ----------------------------------------------------------------------------
# Pure-JAX reference (mirrors the PyTorch module) for a correctness check
# ----------------------------------------------------------------------------
def reference_mha(raw, Q, K, V, attn_mask, cfg):
    B, S, _ = Q.shape
    H, Dh = cfg.n_head, cfg.d_head

    def lin(x, w, b):
        return x @ w.T + b

    q_s = lin(Q, raw["W_Q_w"], raw["W_Q_b"]).reshape(B, S, H, Dh).transpose(0, 2, 1, 3)
    k_s = lin(K, raw["W_K_w"], raw["W_K_b"]).reshape(B, S, H, Dh).transpose(0, 2, 1, 3)
    v_s = lin(V, raw["W_V_w"], raw["W_V_b"]).reshape(B, S, H, Dh).transpose(0, 2, 1, 3)

    score = jnp.einsum("bhqd,bhkd->bhqk", q_s, k_s) * (1.0 / (Dh ** 0.5))
    score = jnp.where(attn_mask[:, None, :, :], -1e9, score)
    prob = jax.nn.softmax(score, axis=-1)
    ctx = jnp.einsum("bhqk,bhkd->bhqd", prob, v_s)
    ctx = ctx.transpose(0, 2, 1, 3).reshape(B, S, H * Dh)
    out = ctx @ raw["out_w"].T + raw["out_b"]
    return out, prob


if __name__ == "__main__":
    cfg = Config()
    B, S = 2, 8

    key = jax.random.PRNGKey(0)
    kq, kk, kv, kp = jax.random.split(key, 4)
    Q = jax.random.normal(kq, (B, S, cfg.d_hidden), jnp.float32)
    K = jax.random.normal(kk, (B, S, cfg.d_hidden), jnp.float32)
    V = jax.random.normal(kv, (B, S, cfg.d_hidden), jnp.float32)

    # causal mask (True = masked), shape [B, S, S] like the PyTorch attn_mask
    causal = jnp.triu(jnp.ones((S, S), dtype=jnp.bool_), k=1)
    attn_mask = jnp.broadcast_to(causal, (B, S, S))

    raw = init_params(kp, cfg)
    params = prepare_params(raw, cfg)

    output, attn_prob = multi_head_attention(params, Q, K, V, attn_mask, cfg)
    jax.block_until_ready((output, attn_prob))

    assert output.shape == (B, S, cfg.d_hidden)
    assert attn_prob.shape == (B, cfg.n_head, S, S)

    ref_out, ref_prob = reference_mha(raw, Q, K, V, attn_mask, cfg)
    np.testing.assert_allclose(np.asarray(output), np.asarray(ref_out),
                               atol=1e-3, rtol=1e-3)
    np.testing.assert_allclose(np.asarray(attn_prob), np.asarray(ref_prob),
                               atol=1e-3, rtol=1e-3)

    print("KERNEL_OK")
</pallas_src>

<mosaic_0001>
module attributes {stable_mosaic.version = 11 : i64} {
  func.func @_mha_kernel(%arg0: memref<16x32xf32, #tpu.memory_space<vmem>>, %arg1: memref<16x32xf32, #tpu.memory_space<vmem>>, %arg2: memref<16x32xf32, #tpu.memory_space<vmem>>, %arg3: memref<2x8x8xi8, #tpu.memory_space<vmem>>, %arg4: memref<32x96xf32, #tpu.memory_space<vmem>>, %arg5: memref<1x96xf32, #tpu.memory_space<vmem>>, %arg6: memref<32x32xf32, #tpu.memory_space<vmem>>, %arg7: memref<1x32xf32, #tpu.memory_space<vmem>>, %arg8: memref<16x32xf32, #tpu.memory_space<vmem>>, %arg9: memref<2x4x8x8xf32, #tpu.memory_space<vmem>>) attributes {dimension_semantics = [], scalar_prefetch = 0 : i64, scratch_operands = 0 : i64, tpu.core_type = #tpu.core_type<tc>} {
    %c0 = arith.constant 0 : index
    %c0_0 = arith.constant 0 : index
    %0 = vector.load %arg4[%c0, %c0_0] : memref<32x96xf32, #tpu.memory_space<vmem>>, vector<32x96xf32>
    %c0_1 = arith.constant 0 : index
    %c0_2 = arith.constant 0 : index
    %1 = vector.load %arg5[%c0_1, %c0_2] : memref<1x96xf32, #tpu.memory_space<vmem>>, vector<1x96xf32>
    %c0_3 = arith.constant 0 : index
    %c0_4 = arith.constant 0 : index
    %2 = vector.load %arg0[%c0_3, %c0_4] : memref<16x32xf32, #tpu.memory_space<vmem>>, vector<16x32xf32>
    %3 = vector.extract_strided_slice %0 {offsets = [0, 0], sizes = [32, 32], strides = [1, 1]} : vector<32x96xf32> to vector<32x32xf32>
    %cst = arith.constant dense<0.000000e+00> : vector<16x32xf32>
    %4 = tpu.matmul %2, %3, %cst {dimension_numbers = #tpu.dot_dimension_numbers<[1], [0], [0], [1], [0, 0, 1, 1], [], []>, precision = #tpu.contract_precision<fp32>} : vector<16x32xf32>, vector<32x32xf32>, vector<16x32xf32> -> vector<16x32xf32>
    %5 = vector.extract_strided_slice %1 {offsets = [0, 0], sizes = [1, 32], strides = [1, 1]} : vector<1x96xf32> to vector<1x32xf32>
    %6 = vector.broadcast %5 : vector<1x32xf32> to vector<16x32xf32>
    %7 = arith.addf %4, %6 : vector<16x32xf32>
    %c0_5 = arith.constant 0 : index
    %c0_6 = arith.constant 0 : index
    %8 = vector.load %arg1[%c0_5, %c0_6] : memref<16x32xf32, #tpu.memory_space<vmem>>, vector<16x32xf32>
    %9 = vector.extract_strided_slice %0 {offsets = [0, 32], sizes = [32, 32], strides = [1, 1]} : vector<32x96xf32> to vector<32x32xf32>
    %cst_7 = arith.constant dense<0.000000e+00> : vector<16x32xf32>
    %10 = tpu.matmul %8, %9, %cst_7 {dimension_numbers = #tpu.dot_dimension_numbers<[1], [0], [0], [1], [0, 0, 1, 1], [], []>, precision = #tpu.contract_precision<fp32>} : vector<16x32xf32>, vector<32x32xf32>, vector<16x32xf32> -> vector<16x32xf32>
    %11 = vector.extract_strided_slice %1 {offsets = [0, 32], sizes = [1, 32], strides = [1, 1]} : vector<1x96xf32> to vector<1x32xf32>
    %12 = vector.broadcast %11 : vector<1x32xf32> to vector<16x32xf32>
    %13 = arith.addf %10, %12 : vector<16x32xf32>
    %c0_8 = arith.constant 0 : index
    %c0_9 = arith.constant 0 : index
    %14 = vector.load %arg2[%c0_8, %c0_9] : memref<16x32xf32, #tpu.memory_space<vmem>>, vector<16x32xf32>
    %15 = vector.extract_strided_slice %0 {offsets = [0, 64], sizes = [32, 32], strides = [1, 1]} : vector<32x96xf32> to vector<32x32xf32>
    %cst_10 = arith.constant dense<0.000000e+00> : vector<16x32xf32>
    %16 = tpu.matmul %14, %15, %cst_10 {dimension_numbers = #tpu.dot_dimension_numbers<[1], [0], [0], [1], [0, 0, 1, 1], [], []>, precision = #tpu.contract_precision<fp32>} : vector<16x32xf32>, vector<32x32xf32>, vector<16x32xf32> -> vector<16x32xf32>
    %17 = vector.extract_strided_slice %1 {offsets = [0, 64], sizes = [1, 32], strides = [1, 1]} : vector<1x96xf32> to vector<1x32xf32>
    %18 = vector.broadcast %17 : vector<1x32xf32> to vector<16x32xf32>
    %19 = arith.addf %16, %18 : vector<16x32xf32>
    %20 = vector.shape_cast %7 : vector<16x32xf32> to vector<2x8x32xf32>
    %21 = vector.shape_cast %13 : vector<16x32xf32> to vector<2x8x32xf32>
    %22 = vector.shape_cast %19 : vector<16x32xf32> to vector<2x8x32xf32>
    %c0_11 = arith.constant 0 : index
    %c0_12 = arith.constant 0 : index
    %c0_13 = arith.constant 0 : index
    %23 = vector.load %arg3[%c0_11, %c0_12, %c0_13] : memref<2x8x8xi8, #tpu.memory_space<vmem>>, vector<2x8x8xi8>
    %c0_i8 = arith.constant 0 : i8
    %24 = vector.broadcast %c0_i8 : i8 to vector<2x8x8xi8>
    %25 = arith.cmpi ne, %23, %24 : vector<2x8x8xi8>
    %cst_14 = arith.constant 0.000000e+00 : f32
    %26 = vector.broadcast %cst_14 : f32 to vector<16x32xf32>
    %27 = vector.extract_strided_slice %20 {offsets = [0, 0, 0], sizes = [2, 8, 8], strides = [1, 1, 1]} : vector<2x8x32xf32> to vector<2x8x8xf32>
    %28 = vector.extract_strided_slice %21 {offsets = [0, 0, 0], sizes = [2, 8, 8], strides = [1, 1, 1]} : vector<2x8x32xf32> to vector<2x8x8xf32>
    %29 = vector.extract_strided_slice %22 {offsets = [0, 0, 0], sizes = [2, 8, 8], strides = [1, 1, 1]} : vector<2x8x32xf32> to vector<2x8x8xf32>
    "tpu.trace_start"() <{level = 10 : i32, message = "bqd,bkd->bqk"}> : () -> ()
    %cst_15 = arith.constant dense<0.000000e+00> : vector<2x8x8xf32>
    %30 = tpu.matmul %27, %28, %cst_15 {dimension_numbers = #tpu.dot_dimension_numbers<[2], [2], [1], [1], [0, 0, 0, 1, 1, 1], [0], [0]>, precision = #tpu.contract_precision<fp32>} : vector<2x8x8xf32>, vector<2x8x8xf32>, vector<2x8x8xf32> -> vector<2x8x8xf32>
    %cst_16 = arith.constant -1.000000e+09 : f32
    "tpu.trace_stop"() : () -> ()
    %31 = vector.broadcast %cst_16 : f32 to vector<2x8x8xf32>
    %32 = arith.select %25, %31, %30 : vector<2x8x8xi1>, vector<2x8x8xf32>
    %cst_17 = arith.constant dense<0xFF800000> : vector<2x8xf32>
    %33 = vector.multi_reduction <maximumf>, %32, %cst_17 [2] : vector<2x8x8xf32> to vector<2x8xf32>
    %34 = vector.shape_cast %33 : vector<2x8xf32> to vector<2x8x1xf32>
    %35 = vector.broadcast %34 : vector<2x8x1xf32> to vector<2x8x8xf32>
    %36 = arith.subf %32, %35 : vector<2x8x8xf32>
    %37 = math.exp %36 : vector<2x8x8xf32>
    %cst_18 = arith.constant dense<0.000000e+00> : vector<2x8xf32>
    %38 = vector.multi_reduction <add>, %37, %cst_18 [2] : vector<2x8x8xf32> to vector<2x8xf32>
    %39 = vector.shape_cast %38 : vector<2x8xf32> to vector<2x8x1xf32>
    %40 = tpu.reciprocal %39 {approx = true} : vector<2x8x1xf32> -> vector<2x8x1xf32>
    %41 = vector.broadcast %40 : vector<2x8x1xf32> to vector<2x8x8xf32>
    %42 = arith.mulf %37, %41 : vector<2x8x8xf32>
    %c0_19 = arith.constant 0 : index
    %c0_20 = arith.constant 0 : index
    %c0_21 = arith.constant 0 : index
    %c0_22 = arith.constant 0 : index
    %43 = vector.load %arg9[%c0_19, %c0_20, %c0_21, %c0_22] : memref<2x4x8x8xf32, #tpu.memory_space<vmem>>, vector<2x1x8x8xf32>
    %44 = vector.shape_cast %43 : vector<2x1x8x8xf32> to vector<2x8x8xf32>
    %45 = vector.shape_cast %42 : vector<2x8x8xf32> to vector<2x1x8x8xf32>
    tpu.vector_store %arg9[%c0_19, %c0_20, %c0_21, %c0_22], %45 {strides = array<i32>} : memref<2x4x8x8xf32, #tpu.memory_space<vmem>>, vector<2x1x8x8xf32>,
    "tpu.trace_start"() <{level = 10 : i32, message = "bqk,bkd->bqd"}> : () -> ()
    %cst_23 = arith.constant dense<0.000000e+00> : vector<2x8x8xf32>
    %46 = tpu.matmul %42, %29, %cst_23 {dimension_numbers = #tpu.dot_dimension_numbers<[2], [1], [1], [2], [0, 0, 0, 1, 1, 2], [0], [0]>, precision = #tpu.contract_precision<fp32>} : vector<2x8x8xf32>, vector<2x8x8xf32>, vector<2x8x8xf32> -> vector<2x8x8xf32>
    "tpu.trace_stop"() : () -> ()
    %47 = vector.shape_cast %46 : vector<2x8x8xf32> to vector<16x8xf32>
    %c0_24 = arith.constant 0 : index
    %c0_25 = arith.constant 0 : index
    %48 = vector.load %arg6[%c0_24, %c0_25] : memref<32x32xf32, #tpu.memory_space<vmem>>, vector<8x32xf32>
    %cst_26 = arith.constant dense<0.000000e+00> : vector<16x32xf32>
    %49 = tpu.matmul %47, %48, %cst_26 {dimension_numbers = #tpu.dot_dimension_numbers<[1], [0], [0], [1], [0, 0, 1, 1], [], []>, precision = #tpu.contract_precision<fp32>} : vector<16x8xf32>, vector<8x32xf32>, vector<16x32xf32> -> vector<16x32xf32>
    %50 = arith.addf %26, %49 : vector<16x32xf32>
    %51 = vector.extract_strided_slice %20 {offsets = [0, 0, 8], sizes = [2, 8, 8], strides = [1, 1, 1]} : vector<2x8x32xf32> to vector<2x8x8xf32>
    %52 = vector.extract_strided_slice %21 {offsets = [0, 0, 8], sizes = [2, 8, 8], strides = [1, 1, 1]} : vector<2x8x32xf32> to vector<2x8x8xf32>
    %53 = vector.extract_strided_slice %22 {offsets = [0, 0, 8], sizes = [2, 8, 8], strides = [1, 1, 1]} : vector<2x8x32xf32> to vector<2x8x8xf32>
    "tpu.trace_start"() <{level = 10 : i32, message = "bqd,bkd->bqk"}> : () -> ()
    %cst_27 = arith.constant dense<0.000000e+00> : vector<2x8x8xf32>
    %54 = tpu.matmul %51, %52, %cst_27 {dimension_numbers = #tpu.dot_dimension_numbers<[2], [2], [1], [1], [0, 0, 0, 1, 1, 1], [0], [0]>, precision = #tpu.contract_precision<fp32>} : vector<2x8x8xf32>, vector<2x8x8xf32>, vector<2x8x8xf32> -> vector<2x8x8xf32>
    %cst_28 = arith.constant -1.000000e+09 : f32
    "tpu.trace_stop"() : () -> ()
    %55 = vector.broadcast %cst_28 : f32 to vector<2x8x8xf32>
    %56 = arith.select %25, %55, %54 : vector<2x8x8xi1>, vector<2x8x8xf32>
    %cst_29 = arith.constant dense<0xFF800000> : vector<2x8xf32>
    %57 = vector.multi_reduction <maximumf>, %56, %cst_29 [2] : vector<2x8x8xf32> to vector<2x8xf32>
    %58 = vector.shape_cast %57 : vector<2x8xf32> to vector<2x8x1xf32>
    %59 = vector.broadcast %58 : vector<2x8x1xf32> to vector<2x8x8xf32>
    %60 = arith.subf %56, %59 : vector<2x8x8xf32>
    %61 = math.exp %60 : vector<2x8x8xf32>
    %cst_30 = arith.constant dense<0.000000e+00> : vector<2x8xf32>
    %62 = vector.multi_reduction <add>, %61, %cst_30 [2] : vector<2x8x8xf32> to vector<2x8xf32>
    %63 = vector.shape_cast %62 : vector<2x8xf32> to vector<2x8x1xf32>
    %64 = tpu.reciprocal %63 {approx = true} : vector<2x8x1xf32> -> vector<2x8x1xf32>
    %65 = vector.broadcast %64 : vector<2x8x1xf32> to vector<2x8x8xf32>
    %66 = arith.mulf %61, %65 : vector<2x8x8xf32>
    %c0_31 = arith.constant 0 : index
    %c1 = arith.constant 1 : index
    %c0_32 = arith.constant 0 : index
    %c0_33 = arith.constant 0 : index
    %67 = vector.load %arg9[%c0_31, %c1, %c0_32, %c0_33] : memref<2x4x8x8xf32, #tpu.memory_space<vmem>>, vector<2x1x8x8xf32>
    %68 = vector.shape_cast %67 : vector<2x1x8x8xf32> to vector<2x8x8xf32>
    %69 = vector.shape_cast %66 : vector<2x8x8xf32> to vector<2x1x8x8xf32>
    tpu.vector_store %arg9[%c0_31, %c1, %c0_32, %c0_33], %69 {strides = array<i32>} : memref<2x4x8x8xf32, #tpu.memory_space<vmem>>, vector<2x1x8x8xf32>,
    "tpu.trace_start"() <{level = 10 : i32, message = "bqk,bkd->bqd"}> : () -> ()
    %cst_34 = arith.constant dense<0.000000e+00> : vector<2x8x8xf32>
    %70 = tpu.matmul %66, %53, %cst_34 {dimension_numbers = #tpu.dot_dimension_numbers<[2], [1], [1], [2], [0, 0, 0, 1, 1, 2], [0], [0]>, precision = #tpu.contract_precision<fp32>} : vector<2x8x8xf32>, vector<2x8x8xf32>, vector<2x8x8xf32> -> vector<2x8x8xf32>
    "tpu.trace_stop"() : () -> ()
    %71 = vector.shape_cast %70 : vector<2x8x8xf32> to vector<16x8xf32>
    %c8 = arith.constant 8 : index
    %c0_35 = arith.constant 0 : index
    %72 = vector.load %arg6[%c8, %c0_35] : memref<32x32xf32, #tpu.memory_space<vmem>>, vector<8x32xf32>
    %cst_36 = arith.constant dense<0.000000e+00> : vector<16x32xf32>
    %73 = tpu.matmul %71, %72, %cst_36 {dimension_numbers = #tpu.dot_dimension_numbers<[1], [0], [0], [1], [0, 0, 1, 1], [], []>, precision = #tpu.contract_precision<fp32>} : vector<16x8xf32>, vector<8x32xf32>, vector<16x32xf32> -> vector<16x32xf32>
    %74 = arith.addf %50, %73 : vector<16x32xf32>
    %75 = vector.extract_strided_slice %20 {offsets = [0, 0, 16], sizes = [2, 8, 8], strides = [1, 1, 1]} : vector<2x8x32xf32> to vector<2x8x8xf32>
    %76 = vector.extract_strided_slice %21 {offsets = [0, 0, 16], sizes = [2, 8, 8], strides = [1, 1, 1]} : vector<2x8x32xf32> to vector<2x8x8xf32>
    %77 = vector.extract_strided_slice %22 {offsets = [0, 0, 16], sizes = [2, 8, 8], strides = [1, 1, 1]} : vector<2x8x32xf32> to vector<2x8x8xf32>
    "tpu.trace_start"() <{level = 10 : i32, message = "bqd,bkd->bqk"}> : () -> ()
    %cst_37 = arith.constant dense<0.000000e+00> : vector<2x8x8xf32>
    %78 = tpu.matmul %75, %76, %cst_37 {dimension_numbers = #tpu.dot_dimension_numbers<[2], [2], [1], [1], [0, 0, 0, 1, 1, 1], [0], [0]>, precision = #tpu.contract_precision<fp32>} : vector<2x8x8xf32>, vector<2x8x8xf32>, vector<2x8x8xf32> -> vector<2x8x8xf32>
    %cst_38 = arith.constant -1.000000e+09 : f32
    "tpu.trace_stop"() : () -> ()
    %79 = vector.broadcast %cst_38 : f32 to vector<2x8x8xf32>
    %80 = arith.select %25, %79, %78 : vector<2x8x8xi1>, vector<2x8x8xf32>
    %cst_39 = arith.constant dense<0xFF800000> : vector<2x8xf32>
    %81 = vector.multi_reduction <maximumf>, %80, %cst_39 [2] : vector<2x8x8xf32> to vector<2x8xf32>
    %82 = vector.shape_cast %81 : vector<2x8xf32> to vector<2x8x1xf32>
    %83 = vector.broadcast %82 : vector<2x8x1xf32> to vector<2x8x8xf32>
    %84 = arith.subf %80, %83 : vector<2x8x8xf32>
    %85 = math.exp %84 : vector<2x8x8xf32>
    %cst_40 = arith.constant dense<0.000000e+00> : vector<2x8xf32>
    %86 = vector.multi_reduction <add>, %85, %cst_40 [2] : vector<2x8x8xf32> to vector<2x8xf32>
    %87 = vector.shape_cast %86 : vector<2x8xf32> to vector<2x8x1xf32>
    %88 = tpu.reciprocal %87 {approx = true} : vector<2x8x1xf32> -> vector<2x8x1xf32>
    %89 = vector.broadcast %88 : vector<2x8x1xf32> to vector<2x8x8xf32>
    %90 = arith.mulf %85, %89 : vector<2x8x8xf32>
    %c0_41 = arith.constant 0 : index
    %c2 = arith.constant 2 : index
    %c0_42 = arith.constant 0 : index
    %c0_43 = arith.constant 0 : index
    %91 = vector.load %arg9[%c0_41, %c2, %c0_42, %c0_43] : memref<2x4x8x8xf32, #tpu.memory_space<vmem>>, vector<2x1x8x8xf32>
    %92 = vector.shape_cast %91 : vector<2x1x8x8xf32> to vector<2x8x8xf32>
    %93 = vector.shape_cast %90 : vector<2x8x8xf32> to vector<2x1x8x8xf32>
    tpu.vector_store %arg9[%c0_41, %c2, %c0_42, %c0_43], %93 {strides = array<i32>} : memref<2x4x8x8xf32, #tpu.memory_space<vmem>>, vector<2x1x8x8xf32>,
    "tpu.trace_start"() <{level = 10 : i32, message = "bqk,bkd->bqd"}> : () -> ()
    %cst_44 = arith.constant dense<0.000000e+00> : vector<2x8x8xf32>
    %94 = tpu.matmul %90, %77, %cst_44 {dimension_numbers = #tpu.dot_dimension_numbers<[2], [1], [1], [2], [0, 0, 0, 1, 1, 2], [0], [0]>, precision = #tpu.contract_precision<fp32>} : vector<2x8x8xf32>, vector<2x8x8xf32>, vector<2x8x8xf32> -> vector<2x8x8xf32>
    "tpu.trace_stop"() : () -> ()
    %95 = vector.shape_cast %94 : vector<2x8x8xf32> to vector<16x8xf32>
    %c16 = arith.constant 16 : index
    %c0_45 = arith.constant 0 : index
    %96 = vector.load %arg6[%c16, %c0_45] : memref<32x32xf32, #tpu.memory_space<vmem>>, vector<8x32xf32>
    %cst_46 = arith.constant dense<0.000000e+00> : vector<16x32xf32>
    %97 = tpu.matmul %95, %96, %cst_46 {dimension_numbers = #tpu.dot_dimension_numbers<[1], [0], [0], [1], [0, 0, 1, 1], [], []>, precision = #tpu.contract_precision<fp32>} : vector<16x8xf32>, vector<8x32xf32>, vector<16x32xf32> -> vector<16x32xf32>
    %98 = arith.addf %74, %97 : vector<16x32xf32>
    %99 = vector.extract_strided_slice %20 {offsets = [0, 0, 24], sizes = [2, 8, 8], strides = [1, 1, 1]} : vector<2x8x32xf32> to vector<2x8x8xf32>
    %100 = vector.extract_strided_slice %21 {offsets = [0, 0, 24], sizes = [2, 8, 8], strides = [1, 1, 1]} : vector<2x8x32xf32> to vector<2x8x8xf32>
    %101 = vector.extract_strided_slice %22 {offsets = [0, 0, 24], sizes = [2, 8, 8], strides = [1, 1, 1]} : vector<2x8x32xf32> to vector<2x8x8xf32>
    "tpu.trace_start"() <{level = 10 : i32, message = "bqd,bkd->bqk"}> : () -> ()
    %cst_47 = arith.constant dense<0.000000e+00> : vector<2x8x8xf32>
    %102 = tpu.matmul %99, %100, %cst_47 {dimension_numbers = #tpu.dot_dimension_numbers<[2], [2], [1], [1], [0, 0, 0, 1, 1, 1], [0], [0]>, precision = #tpu.contract_precision<fp32>} : vector<2x8x8xf32>, vector<2x8x8xf32>, vector<2x8x8xf32> -> vector<2x8x8xf32>
    %cst_48 = arith.constant -1.000000e+09 : f32
    "tpu.trace_stop"() : () -> ()
    %103 = vector.broadcast %cst_48 : f32 to vector<2x8x8xf32>
    %104 = arith.select %25, %103, %102 : vector<2x8x8xi1>, vector<2x8x8xf32>
    %cst_49 = arith.constant dense<0xFF800000> : vector<2x8xf32>
    %105 = vector.multi_reduction <maximumf>, %104, %cst_49 [2] : vector<2x8x8xf32> to vector<2x8xf32>
    %106 = vector.shape_cast %105 : vector<2x8xf32> to vector<2x8x1xf32>
    %107 = vector.broadcast %106 : vector<2x8x1xf32> to vector<2x8x8xf32>
    %108 = arith.subf %104, %107 : vector<2x8x8xf32>
    %109 = math.exp %108 : vector<2x8x8xf32>
    %cst_50 = arith.constant dense<0.000000e+00> : vector<2x8xf32>
    %110 = vector.multi_reduction <add>, %109, %cst_50 [2] : vector<2x8x8xf32> to vector<2x8xf32>
    %111 = vector.shape_cast %110 : vector<2x8xf32> to vector<2x8x1xf32>
    %112 = tpu.reciprocal %111 {approx = true} : vector<2x8x1xf32> -> vector<2x8x1xf32>
    %113 = vector.broadcast %112 : vector<2x8x1xf32> to vector<2x8x8xf32>
    %114 = arith.mulf %109, %113 : vector<2x8x8xf32>
    %c0_51 = arith.constant 0 : index
    %c3 = arith.constant 3 : index
    %c0_52 = arith.constant 0 : index
    %c0_53 = arith.constant 0 : index
    %115 = vector.load %arg9[%c0_51, %c3, %c0_52, %c0_53] : memref<2x4x8x8xf32, #tpu.memory_space<vmem>>, vector<2x1x8x8xf32>
    %116 = vector.shape_cast %115 : vector<2x1x8x8xf32> to vector<2x8x8xf32>
    %117 = vector.shape_cast %114 : vector<2x8x8xf32> to vector<2x1x8x8xf32>
    tpu.vector_store %arg9[%c0_51, %c3, %c0_52, %c0_53], %117 {strides = array<i32>} : memref<2x4x8x8xf32, #tpu.memory_space<vmem>>, vector<2x1x8x8xf32>,
    "tpu.trace_start"() <{level = 10 : i32, message = "bqk,bkd->bqd"}> : () -> ()
    %cst_54 = arith.constant dense<0.000000e+00> : vector<2x8x8xf32>
    %118 = tpu.matmul %114, %101, %cst_54 {dimension_numbers = #tpu.dot_dimension_numbers<[2], [1], [1], [2], [0, 0, 0, 1, 1, 2], [0], [0]>, precision = #tpu.contract_precision<fp32>} : vector<2x8x8xf32>, vector<2x8x8xf32>, vector<2x8x8xf32> -> vector<2x8x8xf32>
    "tpu.trace_stop"() : () -> ()
    %119 = vector.shape_cast %118 : vector<2x8x8xf32> to vector<16x8xf32>
    %c24 = arith.constant 24 : index
    %c0_55 = arith.constant 0 : index
    %120 = vector.load %arg6[%c24, %c0_55] : memref<32x32xf32, #tpu.memory_space<vmem>>, vector<8x32xf32>
    %cst_56 = arith.constant dense<0.000000e+00> : vector<16x32xf32>
    %121 = tpu.matmul %119, %120, %cst_56 {dimension_numbers = #tpu.dot_dimension_numbers<[1], [0], [0], [1], [0, 0, 1, 1], [], []>, precision = #tpu.contract_precision<fp32>} : vector<16x8xf32>, vector<8x32xf32>, vector<16x32xf32> -> vector<16x32xf32>
    %122 = arith.addf %98, %121 : vector<16x32xf32>
    %c0_57 = arith.constant 0 : index
    %c0_58 = arith.constant 0 : index
    %123 = vector.load %arg7[%c0_57, %c0_58] : memref<1x32xf32, #tpu.memory_space<vmem>>, vector<1x32xf32>
    %124 = vector.broadcast %123 : vector<1x32xf32> to vector<16x32xf32>
    %125 = arith.addf %122, %124 : vector<16x32xf32>
    %c0_59 = arith.constant 0 : index
    %c0_60 = arith.constant 0 : index
    %126 = vector.load %arg8[%c0_59, %c0_60] : memref<16x32xf32, #tpu.memory_space<vmem>>, vector<16x32xf32>
    tpu.vector_store %arg8[%c0_59, %c0_60], %125 {strides = array<i32>} : memref<16x32xf32, #tpu.memory_space<vmem>>, vector<16x32xf32>,
    return
  }
}

</mosaic_0001>

<bundles_post_ra>
// kernel: tpu_custom_call.1
= control target key start
LH: loop header
LB: loop body
LE: loop exit
PB: predicated region body
PF: predicated region fallthrough
CT: control target
= control target key end

     0   :  { %15 = vsyncpa [#allocation3], 0  ;;  %s13576_s0 = inlined_call_operand.hbm [shape: f32[16,32], index: 0, kind: input, shape index: {}]   ;;  %s13577_s1 = inlined_call_operand.hbm [shape: f32[16,32], index: 1, kind: input, shape index: {}]   ;;  %s13578_s2 = inlined_call_operand.hbm [shape: f32[16,32], index: 2, kind: input, shape index: {}]   ;;  %s13579_s3 = inlined_call_operand.vmem [shape: s8[2,8,8], index: 3, kind: input, shape index: {}]   ;;  %s13580_s4 = inlined_call_operand.hbm [shape: f32[32,96], index: 4, kind: input, shape index: {}]   ;;  %s13581_s5 = inlined_call_operand.vmem [shape: f32[1,96], index: 5, kind: input, shape index: {}]   ;;  %s13582_s6 = inlined_call_operand.hbm [shape: f32[32,32], index: 6, kind: input, shape index: {}]   ;;  %s13583_s7 = inlined_call_operand.vmem [shape: f32[1,32], index: 7, kind: input, shape index: {}]   ;;  %s13584_s8 = inlined_call_operand.hbm [shape: f32[16,32], index: 8, kind: output, shape index: {0}]   ;;  %s13585_s9 = inlined_call_operand.hbm [shape: f32[2,4,8,8], index: 9, kind: output, shape index: {1}]  }
   0x1   :  { %16 = vsyncpa [#allocation6], 0 }
   0x2   :  { %17 = vsyncpa [#allocation9], 0 }
   0x3   :  { %18 = vsyncpa [#allocation4], 0 }
   0x4   :  { %19 = vsyncpa [#allocation13], 0  ;;  %s12520_s30 = smov [#allocation5]   ;;  %s12521_s11 = smov [#allocation8]  }
   0x5   :  { %s37_s10 = sshll.u32 %s12520_s30, 4  ;;  %s63_s12 = sshll.u32 %s12521_s11, 4  ;;  %s38_s10 = int_to_ptr.vmem [resolvable:$true] %s37_s10  ;;  %s64_s12 = int_to_ptr.vmem [resolvable:$true] %s63_s12 }
   0x6   :  { %s12378_s13 = scalar_lea.vmem %s38_s10, 256  ;;  %p12383_p1 = scmp.lt.s32.totalorder %s38_s10, %s38_s10 }
   0x7   :  { %p12379_p0 = scmp.ne.s32.totalorder %s38_s10, %s12378_s13  ;;  %p12384_p2 = scmp.lt.s32.totalorder %s12378_s13, %s12378_s13 }
   0x9   :  { %p12385_p3 = por %p12384_p2, %p12383_p1 }
   0xb   :  { %p12386_p4 = pnand %p12385_p3, %p12379_p0 }
   0xd   :  { %12389 = shalt.err (!%p12386_p4)
}
   0xe   :  { %s12522_s14 = smov 128   ;;  %s12523_s15 = smov 8  }
   0xf   :  { %43 = dma.hbm_to_vmem [thread:$0]  %s13577_s1, 256, %s38_s10, [#allocation6], %s12522_s14, %s12522_s14, %s12523_s15  }
  0x10   :  { %s12398_s18 = scalar_lea.vmem %s64_s12, 512  ;;  %p12403_p6 = scmp.lt.s32.totalorder %s64_s12, %s64_s12 }
  0x11   :  { %p12399_p5 = scmp.ne.s32.totalorder %s64_s12, %s12398_s18  ;;  %p12404_p7 = scmp.lt.s32.totalorder %s12398_s18, %s12398_s18 }
  0x13   :  { %p12405_p8 = por %p12404_p7, %p12403_p6 }
  0x15   :  { %p12406_p9 = pnand %p12405_p8, %p12399_p5 }
  0x17   :  { %12409 = shalt.err (!%p12406_p9)
}
  0x18   :  { %69 = dma.hbm_to_vmem [thread:$0]  %s13580_s4, 512, %s64_s12, [#allocation9], %s12522_s14, %s12522_s14, %s12523_s15  }
  0x19   :  { %s12524_s21 = smov [#allocation2]   ;;  %s12525_s23 = smov [#allocation7]  }
  0x1a   :  { %s25_s22 = sshll.u32 %s12524_s21, 4  ;;  %s49_s24 = sshll.u32 %s12525_s23, 4  ;;  %s26_s22 = int_to_ptr.vmem [resolvable:$true] %s25_s22  ;;  %s50_s24 = int_to_ptr.vmem [resolvable:$true] %s49_s24 }
  0x1b   :  { %s12418_s1 = scalar_lea.vmem %s26_s22, 256  ;;  %p12423_p11 = scmp.lt.s32.totalorder %s26_s22, %s26_s22 }
  0x1c   :  { %p12419_p10 = scmp.ne.s32.totalorder %s26_s22, %s12418_s1  ;;  %p12424_p12 = scmp.lt.s32.totalorder %s12418_s1, %s12418_s1 }
  0x1e   :  { %p12425_p13 = por %p12424_p12, %p12423_p11 }
  0x20   :  { %p12426_p0 = pnand %p12425_p13, %p12419_p10 }
  0x22   :  { %12429 = shalt.err (!%p12426_p0)
}
  0x23   :  { %31 = dma.hbm_to_vmem [thread:$0]  %s13576_s0, 256, %s26_s22, [#allocation3], %s12522_s14, %s12522_s14, %s12523_s15  }
  0x24   :  { %s12438_s4 = scalar_lea.vmem %s50_s24, 256  ;;  %p12443_p2 = scmp.lt.s32.totalorder %s50_s24, %s50_s24 }
  0x25   :  { %p12439_p1 = scmp.ne.s32.totalorder %s50_s24, %s12438_s4  ;;  %p12444_p3 = scmp.lt.s32.totalorder %s12438_s4, %s12438_s4 }
  0x27   :  { %p12445_p4 = por %p12444_p3, %p12443_p2 }
  0x29   :  { %p12446_p5 = pnand %p12445_p4, %p12439_p1 }
  0x2b   :  { %12449 = shalt.err (!%p12446_p5)
}
  0x2c   :  { %55 = dma.hbm_to_vmem [thread:$0]  %s13578_s2, 256, %s50_s24, [#allocation6], %s12522_s14, %s12522_s14, %s12523_s15  }
  0x2d   :  { %s12526_s29 = smov [#allocation10]  }
  0x2e   :  { %s77_s30 = sshll.u32 %s12526_s29, 4  ;;  %s78_s30 = int_to_ptr.vmem [resolvable:$true] %s77_s30 }
  0x2f   :  { %s12458_s10 = scalar_lea.vmem %s78_s30, 512  ;;  %p12463_p7 = scmp.lt.s32.totalorder %s78_s30, %s78_s30 }
  0x30   :  { %p12459_p6 = scmp.ne.s32.totalorder %s78_s30, %s12458_s10  ;;  %p12464_p8 = scmp.lt.s32.totalorder %s12458_s10, %s12458_s10 }
  0x32   :  { %p12465_p9 = por %p12464_p8, %p12463_p7 }
  0x34   :  { %p12466_p10 = pnand %p12465_p9, %p12459_p6 }
  0x36   :  { %12469 = shalt.err (!%p12466_p10)
}
  0x37   :  { %83 = dma.hbm_to_vmem [thread:$0]  %s13582_s6, 512, %s78_s30, [#allocation9], %s12522_s14, %s12522_s14, %s12523_s15  }
  0x38   :  { %12510 = dma.done.wait [#allocation3], 256  }
  0x39   :  { %12511 = vsyncadd [#allocation3], 4294967040 }
  0x3a   :  { %12512 = dma.done.wait [#allocation6], 512  }
  0x3b   :  { %12513 = vsyncadd [#allocation6], 4294966784 }
  0x3c   :  { %12514 = dma.done.wait [#allocation9], 1024  }
  0x3d   :  { %12515 = vsyncadd [#allocation9], 4294966272  ;;  %vm116_vm0 = vcmask 261120   ;;  %v12617_v0 = vld [vmem:[#allocation8 + $0x18] sm:$0xff]  ;;  %v12619_v1 = vld [vmem:[#allocation8 + $0x8] sm:$0xff]  ;;  %s12527_s2 = smov 96  }
  0x3e   :  { %v12621_v2 = vld [vmem:[#allocation8 + $0x10] sm:$0xff]  ;;  %663 = vrot.lane.b32.xlu0 %v12617_v0, %s12527_s2  ;;  %v12626_v3 = vand.u32 4294901760, %v12617_v0  ;;  %659 = vrot.lane.b32.xlu1 %v12619_v1, %s12527_s2  ;;  %v12631_v4 = vand.u32 4294901760, %v12619_v1  ;;  %v12636_v6 = vld [vmem:[#allocation8] sm:$0xff]  ;;  %v109_v8 = vld [vmem:[#allocation2 + $0x8] sm:$0xff]  ;;  %s12528_s6 = smov 64  }
  0x3f   :  { %v12634_v5 = vand.u32 4294901760, %v12621_v2  ;;  %v108_v7 = vld [vmem:[#allocation2] sm:$0xff]  ;;  %v12639_v9 = vand.u32 4294901760, %v12636_v6  ;;  %v121_v11 = vsel %vm116_vm0, %v109_v8, 0  ;;  %v651_v34 = vld [vmem:[#allocation5] sm:$0xff]  ;;  %v652_v46 = vld [vmem:[#allocation5 + $0x8] sm:$0xff] }
  0x40   :  { %v118_v10 = vsel %vm116_vm0, %v108_v7, 0  ;;  %v238_v12 = vsub.f32 %v12617_v0, %v12626_v3  ;;  %v252_v13 = vsub.f32 %v12619_v1, %v12631_v4  ;;  %11523 = vmatprep.subr.mxu0 %v12626_v3  ;;  %v12655_v17 = vand.u32 4294901760, %v121_v11  ;;  %v12728_v45 = vld [vmem:[%s13581_s5] ss:$0 sm:$0xff]  ;;  %s12533_s19 = smov 112   ;;  %s12534_s20 = smov 104  }
  0x41   :  { %v245_v14 = vsub.f32 %v12621_v2, %v12634_v5  ;;  %v12650_v15 = vand.u32 4294901760, %v118_v10  ;;  %v259_v16 = vsub.f32 %v12636_v6, %v12639_v9  ;;  %11524 = vmatpush3.msra.mxu0 %v12626_v3  ;;  %v673_v39 = vsel %vm116_vm0, %v651_v34, 0  ;;  %s12535_s21 = smov [#allocation12]  }
  0x42   :  { %661 = vrot.lane.b32.xlu0 %v12621_v2, %s12527_s2  ;;  %657 = vrot.lane.b32.xlu1 %v12636_v6, %s12527_s2  ;;  %v239_v18 = vand.u32 4294901760, %v238_v12  ;;  %v12663_v20 = vand.u32 4294901760, %v252_v13  ;;  %v203_v23 = vsub.f32 %v121_v11, %v12655_v17  ;;  %v12680_v40 = vand.u32 4294901760, %v673_v39  ;;  %s11131_s22 = sshll.u32 %s12535_s21, 4  ;;  %s11132_s22 = int_to_ptr.vmem [resolvable:$true] %s11131_s22 }
  0x43   :  { %v12661_v19 = vand.u32 4294901760, %v245_v14  ;;  %v193_v21 = vsub.f32 %v118_v10, %v12650_v15  ;;  %11525 = vmatprep.subr.mxu0 %v12634_v5  ;;  %v12667_v22 = vand.u32 4294901760, %v259_v16  ;;  %11542 = vmatprep.mubr.f32.mxu1 %v12650_v15  ;;  %v676_v47 = vsel %vm116_vm0, %v652_v46, 0  ;;  %s12470_s23 = scalar_lea.vmem %s11132_s22, 1024  ;;  %p12475_p12 = scmp.lt.s32.totalorder %s11132_s22, %s11132_s22 }
  0x44   :  { %v240_v24 = vsub.f32 %v238_v12, %v239_v18  ;;  %11526 = vmatpush3.msra.mxu0 %v12634_v5  ;;  %v254_v26 = vsub.f32 %v252_v13, %v12663_v20  ;;  %v204_v28 = vand.u32 4294901760, %v203_v23  ;;  %v12686_v41 = vsub.f32 %v673_v39, %v12680_v40  ;;  %p12471_p11 = scmp.ne.s32.totalorder %s11132_s22, %s12470_s23  ;;  %p12476_p13 = scmp.lt.s32.totalorder %s12470_s23, %s12470_s23 }
  0x45   :  { %v247_v25 = vsub.f32 %v245_v14, %v12661_v19  ;;  %v194_v27 = vand.u32 4294901760, %v193_v21  ;;  %11527 = vmatprep.subr.mxu0 %v12631_v4  ;;  %v261_v32 = vsub.f32 %v259_v16, %v12667_v22  ;;  %v12733_v48 = vand.u32 4294901760, %v676_v47 }
  0x46   :  { %v241_v29 = vand.u32 4294901760, %v240_v24  ;;  %11528 = vmatpush3.msra.mxu0 %v12631_v4  ;;  %v205_v33 = vsub.f32 %v203_v23, %v204_v28  ;;  %v255_v35 = vand.u32 4294901760, %v254_v26  ;;  %v749_v42 = vand.u32 4294901760, %v12686_v41  ;;  %1214 = vrot.lane.b32.xlu0 %v12617_v0, %s12528_s6  ;;  %p12477_p0 = por %p12476_p13, %p12475_p12 }
  0x47   :  { %v248_v30 = vand.u32 4294901760, %v247_v25  ;;  %v195_v31 = vsub.f32 %v193_v21, %v194_v27  ;;  %11529 = vmatprep.subr.mxu0 %v12639_v9  ;;  %v262_v38 = vand.u32 4294901760, %v261_v32  ;;  %1212 = vrot.lane.b32.xlu1 %v12621_v2, %s12528_s6  ;;  %v12736_v49 = vsub.f32 %v676_v47, %v12733_v48 }
  0x48   :  { %11534 = vmatprep.subr.mxu1 %v241_v29  ;;  %11530 = vmatpush3.msra.mxu0 %v12639_v9  ;;  %v206_v37 = vand.u32 4294901760, %v205_v33  ;;  %v750_v43 = vsub.f32 %v12686_v41, %v749_v42  ;;  %vm12530_vm1 = vmmov 0   ;;  %vm1761_vm2 = vcmask 64512   ;;  %p12478_p1 = pnand %p12477_p0, %p12471_p11 }
  0x49   :  { %v196_v36 = vand.u32 4294901760, %v195_v31  ;;  %11535 = vmatpush3.msra.mxu1 %v241_v29  ;;  %11545 = vmatprep.subr.mxu0 %v238_v12  ;;  %v759_v54 = vand.u32 4294901760, %v12736_v49 }
  0x4a   :  { %11536 = vmatprep.subr.mxu1 %v248_v30  ;;  %v751_v44 = vand.u32 4294901760, %v750_v43  ;;  %1210 = vrot.lane.b32.xlu0 %v12619_v1, %s12528_s6 }
  0x4b   :  { %11531 = vmatprep.mubr.f32.mxu0 %v196_v36  ;;  %11537 = vmatpush3.msra.mxu1 %v248_v30  ;;  %v760_v62 = vsub.f32 %v12736_v49, %v759_v54 }
  0x4c   :  { %11532 = vmatmul.mubr.f32.vlgmr.msra.gmra.mxu0 %v206_v37  ;;  %11538 = vmatprep.subr.mxu1 %v255_v35 }
  0x4d   :  { %11546 = vmatpush3.msra.mxu0 %v238_v12  ;;  %11539 = vmatpush3.msra.mxu1 %v255_v35 }
  0x4e   :  { %11547 = vmatprep.subr.mxu0 %v245_v14  ;;  %11540 = vmatprep.subr.mxu1 %v262_v38 }
  0x4f   :  { %11548 = vmatpush3.msra.mxu0 %v245_v14  ;;  %11541 = vmatpush3.msra.mxu1 %v262_v38 }
  0x50   :  { %11549 = vmatprep.subr.mxu0 %v252_v13  ;;  %11556 = vmatprep.subr.mxu1 %v12626_v3 }
  0x51   :  { %11543 = vmatmul.mubr.f32.vlgmr.msra.gmra.mxu1 %v12655_v17  ;;  %11550 = vmatpush3.msra.mxu0 %v252_v13 }
  0x52   :  { %11557 = vmatpush3.msra.mxu1 %v12626_v3  ;;  %11551 = vmatprep.subr.mxu0 %v259_v16 }
  0x53   :  { %11558 = vmatprep.subr.mxu1 %v12634_v5  ;;  %11552 = vmatpush3.msra.mxu0 %v259_v16 }
  0x54   :  { %11559 = vmatpush3.msra.mxu1 %v12634_v5  ;;  %11553 = vmatprep.mubr.f32.mxu0 %v193_v21 }
  0x55   :  { %11560 = vmatprep.subr.mxu1 %v12631_v4  ;;  %11567 = vmatprep.subr.mxu0 %v239_v18 }
  0x56   :  { %11561 = vmatpush3.msra.mxu1 %v12631_v4  ;;  %11554 = vmatmul.mubr.f32.vlgmr.msra.gmra.mxu0 %v203_v23 }
  0x57   :  { %11562 = vmatprep.subr.mxu1 %v12639_v9  ;;  %11568 = vmatpush3.msra.mxu0 %v239_v18 }
  0x58   :  { %11563 = vmatpush3.msra.mxu1 %v12639_v9  ;;  %11564 = vmatprep.mubr.f32.mxu1 %v194_v27 }
  0x59   :  { %11569 = vmatprep.subr.mxu0 %v12661_v19  ;;  %11578 = vmatprep.subr.mxu1 %v12626_v3 }
  0x5a   :  { %11565 = vmatmul.mubr.f32.vlgmr.msra.gmra.mxu1 %v204_v28  ;;  %11570 = vmatpush3.msra.mxu0 %v12661_v19 }
  0x5b   :  { %11579 = vmatpush3.msra.mxu1 %v12626_v3  ;;  %11571 = vmatprep.subr.mxu0 %v12663_v20  ;;  %v1206_v3 = vld [vmem:[#allocation7] sm:$0xff] }
  0x5c   :  { %11580 = vmatprep.subr.mxu1 %v12634_v5  ;;  %11572 = vmatpush3.msra.mxu0 %v12663_v20  ;;  %v1224_v10 = vsel %vm116_vm0, %v1206_v3, 0 }
  0x5d   :  { %11581 = vmatpush3.msra.mxu1 %v12634_v5  ;;  %11573 = vmatprep.subr.mxu0 %v12667_v22  ;;  %v761_v5 = vand.u32 4294901760, %v760_v62  ;;  %v12764_v13 = vand.u32 4294901760, %v1224_v10 }
  0x5e   :  { %11582 = vmatprep.subr.mxu1 %v12631_v4  ;;  %11574 = vmatpush3.msra.mxu0 %v12667_v22 }
  0x5f   :  { %11575 = vmatprep.mubr.f32.mxu0 %v12650_v15  ;;  %11583 = vmatpush3.msra.mxu1 %v12631_v4  ;;  %v12767_v16 = vsub.f32 %v1224_v10, %v12764_v13 }
  0x60   :  { %11576 = vmatmul.mubr.f32.vlgmr.msra.gmra.mxu0 %v12655_v17  ;;  %11584 = vmatprep.subr.mxu1 %v12639_v9 }
  0x61   :  { %11586 = vmatprep.mubr.f32.mxu1 %v12650_v15  ;;  %11585 = vmatpush3.msra.mxu1 %v12639_v9  ;;  %v1300_v18 = vand.u32 4294901760, %v12767_v16 }
  0x62   :  { %11597 = vmatprep.mubr.f32.mxu0 %v751_v44  ;;  %11587 = vmatmul.mubr.f32.vlgmr.msra.gmra.mxu1 %v12655_v17  ;;  %v1207_v17 = vld [vmem:[#allocation7 + $0x8] sm:$0xff] }
  0x63   :  { %11608 = vmatprep.mubr.f32.mxu1 %v12680_v40  ;;  %1208 = vrot.lane.b32.xlu1 %v12636_v6, %s12528_s6  ;;  %v1227_v19 = vsel %vm116_vm0, %v1207_v17, 0  ;;  %v1301_v20 = vsub.f32 %v12767_v16, %v1300_v18 }
  0x64   :  { %669 = vrot.lane.b32.xlu0 %v12728_v45, %s12527_s2  ;;  %v12783_v21 = vand.u32 4294901760, %v1227_v19 }
  0x65   :  { %v1302_v22 = vand.u32 4294901760, %v1301_v20 }
  0x66   :  { %v12795_v23 = vsub.f32 %v1227_v19, %v12783_v21 }
  0x68   :  { %v1310_v25 = vand.u32 4294901760, %v12795_v23 }
  0x6a   :  { %v1311_v32 = vsub.f32 %v12795_v23, %v1310_v25 }
  0xb0   :  { %v664_v50 = vpop.permute.xlu0 %663  ;;  %v660_v51 = vpop.permute.xlu1 %659 }
  0xb1   :  { %v12738_v52 = vand.u32 4294901760, %v664_v50  ;;  %v12740_v53 = vand.u32 4294901760, %v660_v51 }
  0xb3   :  { %v793_v55 = vsub.f32 %v664_v50, %v12738_v52  ;;  %v807_v56 = vsub.f32 %v660_v51, %v12740_v53  ;;  %11589 = vmatprep.subr.mxu0 %v12738_v52 }
  0xb4   :  { %v662_v57 = vpop.permute.xlu0 %661  ;;  %v658_v58 = vpop.permute.xlu1 %657  ;;  %11590 = vmatpush3.msra.mxu0 %v12738_v52 }
  0xb5   :  { %v12747_v59 = vand.u32 4294901760, %v662_v57  ;;  %v12749_v60 = vand.u32 4294901760, %v658_v58  ;;  %v794_v61 = vand.u32 4294901760, %v793_v55  ;;  %v808_v2 = vand.u32 4294901760, %v807_v56 }
  0xb7   :  { %v800_v63 = vsub.f32 %v662_v57, %v12747_v59  ;;  %v814_v0 = vsub.f32 %v658_v58, %v12749_v60  ;;  %11591 = vmatprep.subr.mxu0 %v12747_v59  ;;  %v795_v1 = vsub.f32 %v793_v55, %v794_v61  ;;  %v809_v9 = vsub.f32 %v807_v56, %v808_v2 }
  0xb8   :  { %11592 = vmatpush3.msra.mxu0 %v12747_v59  ;;  %v1215_v24 = vpop.permute.xlu0 %1214 }
  0xb9   :  { %11593 = vmatprep.subr.mxu0 %v12740_v53  ;;  %v796_v4 = vand.u32 4294901760, %v795_v1  ;;  %v801_v6 = vand.u32 4294901760, %v800_v63  ;;  %v815_v7 = vand.u32 4294901760, %v814_v0  ;;  %v810_v14 = vand.u32 4294901760, %v809_v9  ;;  %v1213_v27 = vpop.permute.xlu1 %1212 }
  0xba   :  { %11594 = vmatpush3.msra.mxu0 %v12740_v53  ;;  %v12804_v26 = vand.u32 4294901760, %v1215_v24  ;;  %v12807_v28 = vand.u32 4294901760, %v1213_v27 }
  0xbb   :  { %11595 = vmatprep.subr.mxu0 %v12749_v60  ;;  %11600 = vmatprep.subr.mxu1 %v796_v4  ;;  %v802_v8 = vsub.f32 %v800_v63, %v801_v6  ;;  %v816_v12 = vsub.f32 %v814_v0, %v815_v7 }
  0xbc   :  { %11596 = vmatpush3.msra.mxu0 %v12749_v60  ;;  %11601 = vmatpush3.msra.mxu1 %v796_v4  ;;  %v1344_v29 = vsub.f32 %v1215_v24, %v12804_v26  ;;  %v1351_v30 = vsub.f32 %v1213_v27, %v12807_v28  ;;  %v1211_v31 = vpop.permute.xlu0 %1210 }
  0xbd   :  { %11611 = vmatprep.subr.mxu0 %v793_v55  ;;  %11598 = vmatmul.mubr.f32.vlgmr.msra.gmra.mxu0 %v761_v5  ;;  %v803_v11 = vand.u32 4294901760, %v802_v8  ;;  %v817_v15 = vand.u32 4294901760, %v816_v12  ;;  %v12818_v33 = vand.u32 4294901760, %v1211_v31 }
  0xbe   :  { %11612 = vmatpush3.msra.mxu0 %v793_v55  ;;  %11619 = vmatprep.mubr.f32.mxu0 %v12686_v41  ;;  %v1345_v35 = vand.u32 4294901760, %v1344_v29  ;;  %v1352_v37 = vand.u32 4294901760, %v1351_v30 }
  0xbf   :  { %11602 = vmatprep.subr.mxu1 %v803_v11  ;;  %11613 = vmatprep.subr.mxu0 %v800_v63  ;;  %v1358_v38 = vsub.f32 %v1211_v31, %v12818_v33 }
  0xc0   :  { %11603 = vmatpush3.msra.mxu1 %v803_v11  ;;  %11614 = vmatpush3.msra.mxu0 %v800_v63  ;;  %v1346_v39 = vsub.f32 %v1344_v29, %v1345_v35  ;;  %v1353_v41 = vsub.f32 %v1351_v30, %v1352_v37 }
  0xc1   :  { %11604 = vmatprep.subr.mxu1 %v810_v14  ;;  %11615 = vmatprep.subr.mxu0 %v807_v56  ;;  %v1359_v44 = vand.u32 4294901760, %v1358_v38 }
  0xc2   :  { %11605 = vmatpush3.msra.mxu1 %v810_v14  ;;  %11616 = vmatpush3.msra.mxu0 %v807_v56  ;;  %v1347_v43 = vand.u32 4294901760, %v1346_v39  ;;  %v1354_v46 = vand.u32 4294901760, %v1353_v41 }
  0xc3   :  { %11606 = vmatprep.subr.mxu1 %v817_v15  ;;  %11617 = vmatprep.subr.mxu0 %v814_v0 }
  0xc4   :  { %11607 = vmatpush3.msra.mxu1 %v817_v15  ;;  %11618 = vmatpush3.msra.mxu0 %v814_v0 }
  0xc5   :  { %11609 = vmatmul.mubr.f32.vlgmr.msra.gmra.mxu1 %v12733_v48  ;;  %11622 = vmatprep.subr.mxu1 %v12738_v52 }
  0xc6   :  { %11633 = vmatprep.subr.mxu0 %v794_v61  ;;  %11620 = vmatmul.mubr.f32.vlgmr.msra.gmra.mxu0 %v12736_v49 }
  0xc7   :  { %11623 = vmatpush3.msra.mxu1 %v12738_v52  ;;  %11634 = vmatpush3.msra.mxu0 %v794_v61 }
  0xc8   :  { %11624 = vmatprep.subr.mxu1 %v12747_v59  ;;  %11635 = vmatprep.subr.mxu0 %v801_v6 }
  0xc9   :  { %11625 = vmatpush3.msra.mxu1 %v12747_v59  ;;  %11636 = vmatpush3.msra.mxu0 %v801_v6 }
  0xca   :  { %11626 = vmatprep.subr.mxu1 %v12740_v53  ;;  %11637 = vmatprep.subr.mxu0 %v808_v2 }
  0xcb   :  { %11627 = vmatpush3.msra.mxu1 %v12740_v53  ;;  %11638 = vmatpush3.msra.mxu0 %v808_v2 }
  0xcc   :  { %11628 = vmatprep.subr.mxu1 %v12749_v60  ;;  %11639 = vmatprep.subr.mxu0 %v815_v7 }
  0xcd   :  { %11629 = vmatpush3.msra.mxu1 %v12749_v60  ;;  %11630 = vmatprep.mubr.f32.mxu1 %v749_v42  ;;  %v1312_v42 = vand.u32 4294901760, %v1311_v32 }
  0xce   :  { %11640 = vmatpush3.msra.mxu0 %v815_v7  ;;  %11631 = vmatmul.mubr.f32.vlgmr.msra.gmra.mxu1 %v759_v54 }
  0xcf   :  { %11644 = vmatprep.subr.mxu1 %v12738_v52  ;;  %11641 = vmatprep.mubr.f32.mxu0 %v12680_v40 }
  0xd0   :  { %11645 = vmatpush3.msra.mxu1 %v12738_v52  ;;  %11642 = vmatmul.mubr.f32.vlgmr.msra.gmra.mxu0 %v12733_v48  ;;  %v12529_v52 = vmov 0.0  }
  0xd1   :  { %11646 = vmatprep.subr.mxu1 %v12747_v59  ;;  %11652 = vmatprep.mubr.f32.mxu1 %v12680_v40 }
  0xd2   :  { %11647 = vmatpush3.msra.mxu1 %v12747_v59  ;;  %11663 = vmatprep.mubr.f32.mxu0 %v1302_v22 }
  0xd3   :  { %11648 = vmatprep.subr.mxu1 %v12740_v53  ;;  %11655 = vmatprep.subr.mxu0 %v12804_v26 }
  0xd4   :  { %11649 = vmatpush3.msra.mxu1 %v12740_v53  ;;  %11656 = vmatpush3.msra.mxu0 %v12804_v26 }
  0xd5   :  { %11650 = vmatprep.subr.mxu1 %v12749_v60  ;;  %v1209_v34 = vpop.permute.xlu1 %1208  ;;  %11657 = vmatprep.subr.mxu0 %v12807_v28 }
  0xd6   :  { %11651 = vmatpush3.msra.mxu1 %v12749_v60  ;;  %v12821_v36 = vand.u32 4294901760, %v1209_v34  ;;  %11658 = vmatpush3.msra.mxu0 %v12807_v28  ;;  %v670_v9 = vpop.permute.xlu0 %669 }
  0xd7   :  { %11653 = vmatmul.mubr.f32.vlgmr.msra.gmra.mxu1 %v12733_v48  ;;  %11659 = vmatprep.subr.mxu0 %v12818_v33  ;;  %v1360_v48 = vsub.f32 %v1358_v38, %v1359_v44 }
  0xd8   :  { %11674 = vmatprep.mubr.f32.mxu1 %v12764_v13  ;;  %v1365_v40 = vsub.f32 %v1209_v34, %v12821_v36  ;;  %11660 = vmatpush3.msra.mxu0 %v12818_v33 }
  0xd9   :  { %11661 = vmatprep.subr.mxu0 %v12821_v36  ;;  %11666 = vmatprep.subr.mxu1 %v1347_v43  ;;  %v1361_v50 = vand.u32 4294901760, %v1360_v48 }
  0xda   :  { %v1366_v47 = vand.u32 4294901760, %v1365_v40  ;;  %11662 = vmatpush3.msra.mxu0 %v12821_v36  ;;  %11667 = vmatpush3.msra.mxu1 %v1347_v43 }
  0xdb   :  { %11677 = vmatprep.subr.mxu0 %v1344_v29  ;;  %11664 = vmatmul.mubr.f32.vlgmr.msra.gmra.mxu0 %v1312_v42 }
  0xdc   :  { %v1367_v49 = vsub.f32 %v1365_v40, %v1366_v47  ;;  %11668 = vmatprep.subr.mxu1 %v1354_v46  ;;  %11678 = vmatpush3.msra.mxu0 %v1344_v29 }
  0xdd   :  { %11669 = vmatpush3.msra.mxu1 %v1354_v46  ;;  %11679 = vmatprep.subr.mxu0 %v1351_v30 }
  0xde   :  { %v1368_v51 = vand.u32 4294901760, %v1367_v49  ;;  %11670 = vmatprep.subr.mxu1 %v1361_v50  ;;  %11680 = vmatpush3.msra.mxu0 %v1351_v30 }
  0xdf   :  { %11671 = vmatpush3.msra.mxu1 %v1361_v50  ;;  %11681 = vmatprep.subr.mxu0 %v1358_v38 }
  0xe0   :  { %11672 = vmatprep.subr.mxu1 %v1368_v51  ;;  %11682 = vmatpush3.msra.mxu0 %v1358_v38 }
  0xe1   :  { %11673 = vmatpush3.msra.mxu1 %v1368_v51  ;;  %11683 = vmatprep.subr.mxu0 %v1365_v40 }
  0xe2   :  { %11688 = vmatprep.subr.mxu1 %v12804_v26  ;;  %11675 = vmatmul.mubr.f32.vlgmr.msra.gmra.mxu1 %v12783_v21 }
  0xe3   :  { %11689 = vmatpush3.msra.mxu1 %v12804_v26  ;;  %11696 = vmatprep.mubr.f32.mxu1 %v1300_v18 }
  0xe4   :  { %11690 = vmatprep.subr.mxu1 %v12807_v28  ;;  %11684 = vmatpush3.msra.mxu0 %v1365_v40 }
  0xe5   :  { %11691 = vmatpush3.msra.mxu1 %v12807_v28  ;;  %11685 = vmatprep.mubr.f32.mxu0 %v12767_v16 }
  0xe6   :  { %11692 = vmatprep.subr.mxu1 %v12818_v33  ;;  %11699 = vmatprep.subr.mxu0 %v1345_v35 }
  0xe7   :  { %11693 = vmatpush3.msra.mxu1 %v12818_v33  ;;  %11686 = vmatmul.mubr.f32.vlgmr.msra.gmra.mxu0 %v12795_v23 }
  0xe8   :  { %11694 = vmatprep.subr.mxu1 %v12821_v36  ;;  %11700 = vmatpush3.msra.mxu0 %v1345_v35 }
  0xe9   :  { %11695 = vmatpush3.msra.mxu1 %v12821_v36  ;;  %11701 = vmatprep.subr.mxu0 %v1352_v37 }
  0xea   :  { %11710 = vmatprep.subr.mxu1 %v12804_v26  ;;  %11697 = vmatmul.mubr.f32.vlgmr.msra.gmra.mxu1 %v1310_v25 }
  0xeb   :  { %11711 = vmatpush3.msra.mxu1 %v12804_v26  ;;  %11702 = vmatpush3.msra.mxu0 %v1352_v37 }
  0xec   :  { %11712 = vmatprep.subr.mxu1 %v12807_v28  ;;  %11703 = vmatprep.subr.mxu0 %v1359_v44 }
  0xed   :  { %11713 = vmatpush3.msra.mxu1 %v12807_v28  ;;  %11704 = vmatpush3.msra.mxu0 %v1359_v44 }
  0xee   :  { %11714 = vmatprep.subr.mxu1 %v12818_v33  ;;  %11705 = vmatprep.subr.mxu0 %v1366_v47 }
  0xef   :  { %11715 = vmatpush3.msra.mxu1 %v12818_v33  ;;  %11706 = vmatpush3.msra.mxu0 %v1366_v47 }
  0xf0   :  { %11716 = vmatprep.subr.mxu1 %v12821_v36  ;;  %11707 = vmatprep.mubr.f32.mxu0 %v12764_v13 }
  0xf1   :  { %11717 = vmatpush3.msra.mxu1 %v12821_v36  ;;  %11708 = vmatmul.mubr.f32.vlgmr.msra.gmra.mxu0 %v12783_v21 }
  0xf2   :  { %11718 = vmatprep.mubr.f32.mxu1 %v12764_v13  ;;  %11721 = vmatprep.subr.mxu0 %v12529_v52 }
  0xf3   :  { %11719 = vmatmul.mubr.f32.vlgmr.msra.gmra.mxu1 %v12783_v21  ;;  %11726 = vmatprep.subr.mxu1 %v12529_v52 }
  0xf4   :  { %11723 = vmatprep.mubr.msk.f32.mxu0 %vm12530_vm1, %v12529_v52  ;;  %11728 = vmatprep.mubr.msk.f32.mxu1 %vm12530_vm1, %v12529_v52 }
 0x10c   :  { %v11533_v53 = vpop.f32.mrf.mxu0 }
 0x10d   :  { %v209_v1 = vadd.f32 %v11533_v53, %v12728_v45 }
 0x10e   :  { %v198_v54 = vpop.f32.mrf.mxu0 }
 0x10f   :  { %v199_v56 = vadd.f32 %v12728_v45, %v198_v54 }
 0x111   :  { %v11544_v55 = vpop.f32.mrf.mxu1 }
 0x112   :  { %v306_v6 = vadd.f32 %v11544_v55, %v209_v1 }
 0x113   :  { %v299_v57 = vpop.f32.mrf.mxu1 }
 0x114   :  { %v300_v59 = vadd.f32 %v299_v57, %v199_v56 }
 0x116   :  { %v11555_v58 = vpop.f32.mrf.mxu0 }
 0x117   :  { %v393_v12 = vadd.f32 %v11555_v58, %v306_v6 }
 0x118   :  { %v385_v60 = vpop.f32.mrf.mxu0 }
 0x119   :  { %v386_v62 = vadd.f32 %v385_v60, %v300_v59 }
 0x11a   :  { %v11566_v61 = vpop.f32.mrf.mxu1 }
 0x11b   :  { %v478_v18 = vadd.f32 %v11566_v61, %v393_v12 }
 0x11c   :  { %v469_v63 = vpop.f32.mrf.mxu1 }
 0x11d   :  { %v470_v2 = vadd.f32 %v469_v63, %v386_v62 }
 0x120   :  { %v11577_v0 = vpop.f32.mrf.mxu0 }
 0x121   :  { %v567_v25 = vadd.f32 %v11577_v0, %v478_v18 }
 0x122   :  { %v560_v3 = vpop.f32.mrf.mxu0  ;;  %v11588_v4 = vpop.f32.mrf.mxu1 }
 0x123   :  { %v561_v7 = vadd.f32 %v560_v3, %v470_v2  ;;  %v12872_v33 = vadd.f32 %v11588_v4, %v567_v25 }
 0x124   :  { %v641_v8 = vpop.f32.mrf.mxu1 }
 0x125   :  { %v12865_v13 = vadd.f32 %v641_v8, %v561_v7  ;;  %v2215_v39 = vsel %vm1761_vm2, %v12872_v33, 0 }
 0x126   :  { %v12880_v43 = vand.u32 4294901760, %v2215_v39 }
 0x127   :  { %v1763_v19 = vsel %vm1761_vm2, %v12865_v13, 0 }
 0x128   :  { %v12869_v24 = vand.u32 4294901760, %v1763_v19  ;;  %v2287_v50 = vsub.f32 %v2215_v39, %v12880_v43 }
 0x12a   :  { %v1835_v30 = vsub.f32 %v1763_v19, %v12869_v24  ;;  %v2288_v56 = vand.u32 4294901760, %v2287_v50 }
 0x12c   :  { %v1836_v38 = vand.u32 4294901760, %v1835_v30  ;;  %v2289_v59 = vsub.f32 %v2287_v50, %v2288_v56 }
 0x12e   :  { %v1837_v46 = vsub.f32 %v1835_v30, %v1836_v38  ;;  %v2290_v61 = vand.u32 4294901760, %v2289_v59 }
 0x130   :  { %v1838_v51 = vand.u32 4294901760, %v1837_v46 }
 0x17d   :  { %v11599_v5 = vpop.f32.mrf.mxu0 }
 0x17e   :  { %v764_v14 = vadd.f32 %v11599_v5, %v670_v9 }
 0x17f   :  { %v753_v10 = vpop.f32.mrf.mxu0 }
 0x180   :  { %v754_v15 = vadd.f32 %v753_v10, %v670_v9 }
 0x185   :  { %v11610_v11 = vpop.f32.mrf.mxu1 }
 0x186   :  { %v11621_v17 = vpop.f32.mrf.mxu0  ;;  %v861_v20 = vadd.f32 %v11610_v11, %v764_v14  ;;  %v1757_v14 = vld [vmem:[%s13579_s3] sm:$0x3] }
 0x187   :  { %v854_v16 = vpop.f32.mrf.mxu1  ;;  %vm1759_vm3 = vnez %v1757_v14 }
 0x188   :  { %v855_v21 = vadd.f32 %v854_v16, %v754_v15  ;;  %v940_v23 = vpop.f32.mrf.mxu0  ;;  %v948_v28 = vadd.f32 %v11621_v17, %v861_v20 }
 0x18a   :  { %v941_v29 = vadd.f32 %v940_v23, %v855_v21  ;;  %v12531_v21 = vmov 0  }
 0x18e   :  { %v11632_v22 = vpop.f32.mrf.mxu1 }
 0x18f   :  { %v1033_v31 = vadd.f32 %v11632_v22, %v948_v28  ;;  %v2666_v22 = vsel %vm1759_vm3, 16843009, %v12531_v21 }
 0x190   :  { %v1024_v26 = vpop.f32.mrf.mxu1  ;;  %v11643_v27 = vpop.f32.mrf.mxu0  ;;  %v2668_v28 = vunpack.c.0.s8 %v2666_v22 }
 0x191   :  { %v1025_v32 = vadd.f32 %v1024_v26, %v941_v29  ;;  %v1122_v36 = vadd.f32 %v11643_v27, %v1033_v31 }
 0x192   :  { %v1115_v34 = vpop.f32.mrf.mxu0  ;;  %vm12959_vm4 = vcmp.ne.s32.totalorder %v2668_v28, 0 }
 0x193   :  { %v1116_v37 = vadd.f32 %v1115_v34, %v1025_v32  ;;  %v1758_v34 = vld [vmem:[%s13579_s3 + $0x2] sm:$0x3]  ;;  %s12532_s3 = smov 120  }
 0x194   :  { %vm1760_vm5 = vnez %v1758_v34 }
 0x197   :  { %v11654_v35 = vpop.f32.mrf.mxu1 }
 0x198   :  { %v12876_v41 = vadd.f32 %v11654_v35, %v1122_v36 }
 0x199   :  { %v1196_v40 = vpop.f32.mrf.mxu1 }
 0x19a   :  { %v12878_v42 = vadd.f32 %v1196_v40, %v1116_v37  ;;  %v2218_v48 = vsel %vm1761_vm2, %v12876_v41, 0 }
 0x19b   :  { %v2251_v54 = vand.u32 4294901760, %v2218_v48  ;;  %v12929_v0 = vpop.f32.mrf.mxu0 }
 0x19c   :  { %v1766_v44 = vsel %vm1761_vm2, %v12878_v42, 0 }
 0x19d   :  { %v1799_v47 = vand.u32 4294901760, %v1766_v44  ;;  %v2328_v58 = vsub.f32 %v2218_v48, %v2251_v54  ;;  %v12931_v1 = vpop.f32.mrf.mxu0 }
 0x19f   :  { %11722 = vmatpush3.xpose.msra.mxu0 %v1799_v47  ;;  %v1876_v49 = vsub.f32 %v1766_v44, %v1799_v47  ;;  %v2329_v60 = vand.u32 4294901760, %v2328_v58 }
 0x1a0   :  { %11731 = vmatprep.subr.mxu0 %v12529_v52 }
 0x1a1   :  { %v1877_v53 = vand.u32 4294901760, %v1876_v49  ;;  %v2330_v62 = vsub.f32 %v2328_v58, %v2329_v60 }
 0x1a2   :  { %11724 = vmatmul.mubr.f32.vlgmr.msra.gmra.mxu0 %v1838_v51  ;;  %v12937_v4 = vpop.f32.mrf.mxu1 }
 0x1a3   :  { %11732 = vmatpush3.xpose.msra.mxu0 %v1876_v49  ;;  %11733 = vmatprep.mubr.msk.f32.mxu0 %vm12530_vm1, %v12529_v52  ;;  %v1878_v55 = vsub.f32 %v1876_v49, %v1877_v53  ;;  %v2331_v63 = vand.u32 4294901760, %v2330_v62  ;;  %v2667_v49 = vsel %vm1760_vm5, 16843009, %v12531_v21 }
 0x1a4   :  { %11741 = vmatprep.subr.mxu0 %v12529_v52  ;;  %v12941_v6 = vpop.f32.mrf.mxu1 }
 0x1a5   :  { %v1879_v57 = vand.u32 4294901760, %v1878_v55  ;;  %v2669_v55 = vunpack.c.0.s8 %v2667_v49 }
 0x1a6   :  { %11734 = vmatmul.mubr.f32.vlgmr.msra.gmra.mxu0 %v1835_v30 }
 0x1a7   :  { %11727 = vmatpush3.xpose.msra.mxu1 %v1879_v57  ;;  %11742 = vmatpush3.xpose.msra.mxu0 %v1877_v53  ;;  %v12933_v2 = vpop.f32.mrf.mxu0  ;;  %vm12966_vm6 = vcmp.ne.s32.totalorder %v2669_v55, 0 }
 0x1a8   :  { %11743 = vmatprep.mubr.msk.f32.mxu0 %vm12530_vm1, %v12529_v52  ;;  %11736 = vmatprep.subr.mxu1 %v12529_v52 }
 0x1a9   :  { %11751 = vmatprep.subr.mxu0 %v12529_v52  ;;  %v12935_v3 = vpop.f32.mrf.mxu0 }
 0x1aa   :  { %11729 = vmatmul.mubr.f32.vlgmr.msra.gmra.mxu1 %v12869_v24  ;;  %11744 = vmatmul.mubr.f32.vlgmr.msra.gmra.mxu0 %v12869_v24  ;;  %v12943_v7 = vpop.f32.mrf.mxu1 }
 0x1ab   :  { %11737 = vmatpush3.xpose.msra.mxu1 %v1799_v47  ;;  %11752 = vmatpush3.xpose.msra.mxu0 %v2251_v54 }
 0x1ac   :  { %11738 = vmatprep.mubr.msk.f32.mxu1 %vm12530_vm1, %v12529_v52  ;;  %11753 = vmatprep.mubr.msk.f32.mxu0 %vm12530_vm1, %v12529_v52  ;;  %v12947_v9 = vpop.f32.mrf.mxu1 }
 0x1ad   :  { %11746 = vmatprep.subr.mxu1 %v12529_v52  ;;  %11761 = vmatprep.subr.mxu0 %v12529_v52 }
 0x1ae   :  { %11739 = vmatmul.mubr.f32.vlgmr.msra.gmra.mxu1 %v1836_v38  ;;  %11754 = vmatmul.mubr.f32.vlgmr.msra.gmra.mxu0 %v2290_v61 }
 0x1af   :  { %11747 = vmatpush3.xpose.msra.mxu1 %v1799_v47  ;;  %11762 = vmatpush3.xpose.msra.mxu0 %v2328_v58 }
 0x1b0   :  { %11748 = vmatprep.mubr.msk.f32.mxu1 %vm12530_vm1, %v12529_v52  ;;  %11763 = vmatprep.mubr.msk.f32.mxu0 %vm12530_vm1, %v12529_v52 }
 0x1b1   :  { %11756 = vmatprep.subr.mxu1 %v12529_v52  ;;  %11771 = vmatprep.subr.mxu0 %v12529_v52  ;;  %v12939_v5 = vpop.f32.mrf.mxu0 }
 0x1b2   :  { %11749 = vmatmul.mubr.f32.vlgmr.msra.gmra.mxu1 %v12869_v24  ;;  %11764 = vmatmul.mubr.f32.vlgmr.msra.gmra.mxu0 %v2287_v50 }
 0x1b3   :  { %11757 = vmatpush3.xpose.msra.mxu1 %v2331_v63  ;;  %11772 = vmatpush3.xpose.msra.mxu0 %v2329_v60  ;;  %v12945_v8 = vpop.f32.mrf.mxu0  ;;  %v12949_v11 = vpop.f32.mrf.mxu1 }
 0x1b4   :  { %11758 = vmatprep.mubr.msk.f32.mxu1 %vm12530_vm1, %v12529_v52  ;;  %11773 = vmatprep.mubr.msk.f32.mxu0 %vm12530_vm1, %v12529_v52 }
 0x1b5   :  { %11766 = vmatprep.subr.mxu1 %v12529_v52  ;;  %11781 = vmatprep.subr.mxu0 %v12529_v52  ;;  %v12954_v16 = vpop.f32.mrf.mxu1 }
 0x1b6   :  { %11759 = vmatmul.mubr.f32.vlgmr.msra.gmra.mxu1 %v12880_v43  ;;  %11774 = vmatmul.mubr.f32.vlgmr.msra.gmra.mxu0 %v12880_v43 }
 0x1b7   :  { %11767 = vmatpush3.xpose.msra.mxu1 %v2251_v54  ;;  %11768 = vmatprep.mubr.msk.f32.mxu1 %vm12530_vm1, %v12529_v52 }
 0x1b8   :  { %11776 = vmatprep.subr.mxu1 %v12529_v52  ;;  %11783 = vmatprep.mubr.msk.f32.mxu0 %vm12530_vm1, %v12529_v52 }
 0x1ba   :  { %11769 = vmatmul.mubr.f32.vlgmr.msra.gmra.mxu1 %v2288_v56 }
 0x1bb   :  { %11777 = vmatpush3.xpose.msra.mxu1 %v2251_v54  ;;  %11778 = vmatprep.mubr.msk.f32.mxu1 %vm12530_vm1, %v12529_v52 }
 0x1bc   :  { %11786 = vmatprep.subr.mxu1 %v12529_v52 }
 0x1be   :  { %11779 = vmatmul.mubr.f32.vlgmr.msra.gmra.mxu1 %v12880_v43 }
 0x1bf   :  { %11788 = vmatprep.mubr.msk.f32.mxu1 %vm12530_vm1, %v12529_v52 }
 0x262   :  { %v1840_v10 = vpop.f32.mrf.mxu0 }
 0x264   :  { %v11725_v12 = vpop.f32.mrf.mxu0 }
 0x266   :  { %v1990_v15 = vpop.f32.mrf.mxu0 }
 0x268   :  { %v11735_v17 = vpop.f32.mrf.mxu0 }
 0x26a   :  { %v1916_v18 = vpop.f32.mrf.mxu1  ;;  %v2138_v19 = vpop.f32.mrf.mxu0 }
 0x26b   :  { %v1917_v20 = vadd.f32 %v1916_v18, %v1840_v10 }
 0x26c   :  { %v11730_v23 = vpop.f32.mrf.mxu1  ;;  %v11745_v24 = vpop.f32.mrf.mxu0 }
 0x26d   :  { %v1991_v25 = vadd.f32 %v1990_v15, %v1917_v20 }
 0x26e   :  { %v2064_v26 = vpop.f32.mrf.mxu1  ;;  %v2292_v27 = vpop.f32.mrf.mxu0 }
 0x26f   :  { %v2065_v29 = vadd.f32 %v2064_v26, %v1991_v25 }
 0x270   :  { %v11740_v30 = vpop.f32.mrf.mxu1  ;;  %v11755_v31 = vpop.f32.mrf.mxu0 }
 0x271   :  { %v2139_v32 = vadd.f32 %v2138_v19, %v2065_v29 }
 0x272   :  { %v2210_v35 = vpop.f32.mrf.mxu1  ;;  %v2442_v36 = vpop.f32.mrf.mxu0 }
 0x273   :  { %v2211_v38 = vadd.f32 %v2210_v35, %v2139_v32 }
 0x274   :  { %v11750_v39 = vpop.f32.mrf.mxu1  ;;  %v11765_v40 = vpop.f32.mrf.mxu0 }
 0x275   :  { %v2672_v43 = vsel %vm12959_vm4, -1e+09, %v2211_v38 }
 0x276   :  { %v2368_v44 = vpop.f32.mrf.mxu1  ;;  %v2590_v46 = vpop.f32.mrf.mxu0  ;;  %v2674_v47 = vsel %vm1761_vm2, %v2672_v43, -inf }
 0x277   :  { %v2369_v48 = vadd.f32 %v2368_v44, %v2292_v27  ;;  %2675 = vmax.xlane.f32.xlu1 %v2674_v47 }
 0x278   :  { %v11760_v50 = vpop.f32.mrf.mxu1  ;;  %v11775_v51 = vpop.f32.mrf.mxu0 }
 0x279   :  { %v2443_v53 = vadd.f32 %v2442_v36, %v2369_v48 }
 0x27a   :  { %v2516_v54 = vpop.f32.mrf.mxu1 }
 0x27b   :  { %v2517_v56 = vadd.f32 %v2516_v54, %v2443_v53 }
 0x27c   :  { %v11770_v57 = vpop.f32.mrf.mxu1 }
 0x27d   :  { %v2591_v58 = vadd.f32 %v2590_v46, %v2517_v56 }
 0x27e   :  { %v2662_v59 = vpop.f32.mrf.mxu1 }
 0x27f   :  { %v2663_v61 = vadd.f32 %v2662_v59, %v2591_v58 }
 0x280   :  { %v11780_v62 = vpop.f32.mrf.mxu1 }
 0x281   :  { %v2673_v63 = vsel %vm12966_vm6, -1e+09, %v2663_v61 }
 0x282   :  { %v2677_v10 = vsel %vm1761_vm2, %v2673_v63, -inf }
 0x283   :  { %2678 = vmax.xlane.f32.xlu0 %v2677_v10 }
 0x300   :  { %v2676_v12 = vpop.xlane.xlu1 %2675 }
 0x301   :  { %v2680_v14 = vsub.f32 %v2672_v43, %v2676_v12 }
 0x303   :  { %v2682_v15 = vmul.f32 1.442695, %v2680_v14 }
 0x305   :  { %12338 = vpow2.f32 %v2682_v15 }
 0x30c   :  { %v2679_v17 = vpop.xlane.xlu0 %2678 }
 0x30d   :  { %v2681_v18 = vsub.f32 %v2673_v63, %v2679_v17 }
 0x30f   :  { %v2684_v19 = vmul.f32 1.442695, %v2681_v18 }
 0x311   :  { %12340 = vpow2.f32 %v2684_v19 }
 0x312   :  { %v12339_v20 = vpop.eup %12338 }
 0x313   :  { %v2686_v21 = vsel %vm1761_vm2, %v12339_v20, 0.0 }
 0x314   :  { %2687 = vadd.xlane.f32.xlu0 %v2686_v21 }
 0x31e   :  { %v12341_v22 = vpop.eup %12340 }
 0x31f   :  { %v2689_v23 = vsel %vm1761_vm2, %v12341_v22, 0.0 }
 0x320   :  { %2690 = vadd.xlane.f32.xlu1 %v2689_v23 }
 0x32a   :  { %1220 = vrot.lane.b32.xlu0 %v12728_v45, %s12528_s6 }
 0x32e   :  { %4053 = vrot.lane.b32.xlu0 %v12876_v41, %s12532_s3 }
 0x331   :  { %3599 = vrot.lane.b32.xlu1 %v12878_v42, %s12532_s3 }
 0x335   :  { %3597 = vrot.lane.b32.xlu1 %v12865_v13, %s12532_s3 }
 0x339   :  { %4051 = vrot.lane.b32.xlu1 %v12872_v33, %s12532_s3 }
 0x39d   :  { %v2688_v24 = vpop.xlane.xlu0 %2687 }
 0x39e   :  { %12342 = vrcp.f32 %v2688_v24 }
 0x3a1   :  { %v1221_v25 = vpop.permute.xlu0 %1220 }
 0x3a2   :  { %v1305_v26 = vadd.f32 %v12931_v1, %v1221_v25  ;;  %v1315_v45 = vadd.f32 %v12929_v0, %v1221_v25 }
 0x3a4   :  { %v1406_v27 = vadd.f32 %v12941_v6, %v1305_v26  ;;  %v1412_v28 = vadd.f32 %v12937_v4, %v1315_v45 }
 0x3a5   :  { %v4054_v12 = vpop.permute.xlu0 %4053 }
 0x3a6   :  { %v1492_v29 = vadd.f32 %v12935_v3, %v1406_v27  ;;  %v1499_v30 = vadd.f32 %v12933_v2, %v1412_v28  ;;  %v4057_v19 = vsel %vm1761_vm2, %v4054_v12, 0 }
 0x3a8   :  { %v1576_v31 = vadd.f32 %v12947_v9, %v1492_v29  ;;  %v1584_v32 = vadd.f32 %v12943_v7, %v1499_v30 }
 0x3a9   :  { %v2691_v34 = vpop.xlane.xlu1 %2690 }
 0x3aa   :  { %v1667_v35 = vadd.f32 %v12945_v8, %v1576_v31  ;;  %v1673_v36 = vadd.f32 %v12939_v5, %v1584_v32  ;;  %12344 = vrcp.f32 %v2691_v34 }
 0x3ab   :  { %v12343_v1 = vpop.eup %12342 }
 0x3ac   :  { %v2694_v0 = vmul.f32 %v12343_v1, %v12339_v20  ;;  %v12996_v6 = vadd.f32 %v12954_v16, %v1667_v35  ;;  %v12999_v4 = vadd.f32 %v12949_v11, %v1673_v36 }
 0x3ad   :  { %v3600_v38 = vpop.permute.xlu1 %3599 }
 0x3ae   :  { %2696 = vst.msk [vmem:[#allocation12] sm:$0xff] %vm1761_vm2, %v2694_v0  ;;  %v2732_v2 = vand.u32 4294901760, %v12996_v6  ;;  %v2699_v3 = vsel %vm1761_vm2, %v2694_v0, 0  ;;  %v13007_v9 = vand.u32 4294901760, %v12999_v4  ;;  %v3603_v51 = vsel %vm1761_vm2, %v3600_v38, 0 }
 0x3af   :  { %v2767_v7 = vand.u32 4294901760, %v2699_v3  ;;  %v13024_v56 = vand.u32 4294901760, %v3603_v51 }
 0x3b0   :  { %11782 = vmatpush3.msra.mxu0 %v2732_v2  ;;  %v2809_v8 = vsub.f32 %v12996_v6, %v2732_v2  ;;  %v13011_v43 = vsub.f32 %v12999_v4, %v13007_v9 }
 0x3b1   :  { %11791 = vmatprep.subr.mxu0 %v12529_v52  ;;  %v2768_v5 = vsub.f32 %v2699_v3, %v2767_v7  ;;  %v3598_v49 = vpop.permute.xlu1 %3597  ;;  %v13036_v62 = vsub.f32 %v3603_v51, %v13024_v56 }
 0x3b2   :  { %v2810_v16 = vand.u32 4294901760, %v2809_v8  ;;  %v3259_v50 = vand.u32 4294901760, %v13011_v43  ;;  %v3601_v55 = vsel %vm1761_vm2, %v3598_v49, 0 }
 0x3b3   :  { %v2769_v11 = vand.u32 4294901760, %v2768_v5  ;;  %v13028_v59 = vand.u32 4294901760, %v3601_v55  ;;  %v3714_v17 = vand.u32 4294901760, %v13036_v62 }
 0x3b4   :  { %v2811_v39 = vsub.f32 %v2809_v8, %v2810_v16  ;;  %v3260_v57 = vsub.f32 %v13011_v43, %v3259_v50 }
 0x3b5   :  { %v2770_v40 = vsub.f32 %v2768_v5, %v2769_v11  ;;  %v3672_v14 = vsub.f32 %v3601_v55, %v13028_v59  ;;  %v4052_v18 = vpop.permute.xlu1 %4051  ;;  %v3715_v23 = vsub.f32 %v13036_v62, %v3714_v17 }
 0x3b6   :  { %v2812_v44 = vand.u32 4294901760, %v2811_v39  ;;  %v3261_v63 = vand.u32 4294901760, %v3260_v57  ;;  %v4055_v21 = vsel %vm1761_vm2, %v4052_v18, 0 }
 0x3b7   :  { %v12345_v46 = vpop.eup %12344  ;;  %v2771_v47 = vand.u32 4294901760, %v2770_v40  ;;  %v3673_v20 = vand.u32 4294901760, %v3672_v14  ;;  %v13061_v25 = vand.u32 4294901760, %v4055_v21  ;;  %v3716_v45 = vand.u32 4294901760, %v3715_v23 }
 0x3b8   :  { %v2695_v48 = vmul.f32 %v12345_v46, %v12341_v22  ;;  %11787 = vmatpush3.msra.mxu1 %v2812_v44  ;;  %v13057_v22 = vand.u32 4294901760, %v4057_v19 }
 0x3b9   :  { %11784 = vmatmul.mubr.f32.vlgmr.msra.gmra.mxu0 %v2771_v47  ;;  %11789 = vmatmul.mubr.f32.vlgmr.msra.gmra.mxu1 %v2767_v7  ;;  %v3674_v24 = vsub.f32 %v3672_v14, %v3673_v20  ;;  %v4126_v28 = vsub.f32 %v4055_v21, %v13061_v25 }
 0x3ba   :  { %2697 = vst.msk [vmem:[#allocation12 + $0x20] sm:$0xff] %vm1761_vm2, %v2695_v48  ;;  %11792 = vmatpush3.msra.mxu0 %v2809_v8  ;;  %11796 = vmatprep.subr.mxu1 %v12529_v52  ;;  %v3148_v53 = vsel %vm1761_vm2, %v2695_v48, 0  ;;  %v4167_v26 = vsub.f32 %v4057_v19, %v13057_v22 }
 0x3bb   :  { %11797 = vmatpush3.msra.mxu1 %v2732_v2  ;;  %11793 = vmatprep.mubr.msk.f32.mxu0 %vm12530_vm1, %v12529_v52  ;;  %v3216_v54 = vand.u32 4294901760, %v3148_v53  ;;  %v3675_v27 = vand.u32 4294901760, %v3674_v24  ;;  %v4127_v30 = vand.u32 4294901760, %v4126_v28 }
 0x3bc   :  { %11798 = vmatprep.mubr.msk.f32.mxu1 %vm12530_vm1, %v12529_v52  ;;  %11801 = vmatprep.subr.mxu0 %v12529_v52  ;;  %v4168_v29 = vand.u32 4294901760, %v4167_v26 }
 0x3bd   :  { %11806 = vmatprep.subr.mxu1 %v12529_v52  ;;  %11794 = vmatmul.mubr.f32.vlgmr.msra.gmra.mxu0 %v2768_v5  ;;  %v3217_v58 = vsub.f32 %v3148_v53, %v3216_v54  ;;  %v4128_v32 = vsub.f32 %v4126_v28, %v4127_v30 }
 0x3be   :  { %11799 = vmatmul.mubr.f32.vlgmr.msra.gmra.mxu1 %v2769_v11  ;;  %11802 = vmatpush3.msra.mxu0 %v2810_v16  ;;  %v4169_v31 = vsub.f32 %v4167_v26, %v4168_v29 }
 0x3bf   :  { %11807 = vmatpush3.msra.mxu1 %v2732_v2  ;;  %11803 = vmatprep.mubr.msk.f32.mxu0 %vm12530_vm1, %v12529_v52  ;;  %v3218_v61 = vand.u32 4294901760, %v3217_v58  ;;  %v4129_v35 = vand.u32 4294901760, %v4128_v32 }
 0x3c0   :  { %11808 = vmatprep.mubr.msk.f32.mxu1 %vm12530_vm1, %v12529_v52  ;;  %11811 = vmatprep.subr.mxu0 %v12529_v52  ;;  %v4170_v34 = vand.u32 4294901760, %v4169_v31 }
 0x3c1   :  { %11816 = vmatprep.subr.mxu1 %v12529_v52  ;;  %11804 = vmatmul.mubr.f32.vlgmr.msra.gmra.mxu0 %v2767_v7  ;;  %v3219_v10 = vsub.f32 %v3217_v58, %v3218_v61 }
 0x3c2   :  { %11809 = vmatmul.mubr.f32.vlgmr.msra.gmra.mxu1 %v2767_v7  ;;  %11812 = vmatpush3.msra.mxu0 %v13007_v9 }
 0x3c3   :  { %11817 = vmatpush3.msra.mxu1 %v3261_v63  ;;  %11813 = vmatprep.mubr.msk.f32.mxu0 %vm12530_vm1, %v12529_v52  ;;  %v3220_v15 = vand.u32 4294901760, %v3219_v10 }
 0x3c4   :  { %11818 = vmatprep.mubr.msk.f32.mxu1 %vm12530_vm1, %v12529_v52  ;;  %11821 = vmatprep.subr.mxu0 %v12529_v52 }
 0x3c5   :  { %11826 = vmatprep.subr.mxu1 %v12529_v52  ;;  %11814 = vmatmul.mubr.f32.vlgmr.msra.gmra.mxu0 %v3220_v15 }
 0x3c6   :  { %11819 = vmatmul.mubr.f32.vlgmr.msra.gmra.mxu1 %v3216_v54  ;;  %11822 = vmatpush3.msra.mxu0 %v13011_v43 }
 0x3c7   :  { %11827 = vmatpush3.msra.mxu1 %v13007_v9  ;;  %11823 = vmatprep.mubr.msk.f32.mxu0 %vm12530_vm1, %v12529_v52 }
 0x3c8   :  { %11828 = vmatprep.mubr.msk.f32.mxu1 %vm12530_vm1, %v12529_v52  ;;  %11831 = vmatprep.subr.mxu0 %v12529_v52 }
 0x3c9   :  { %11836 = vmatprep.subr.mxu1 %v12529_v52  ;;  %11824 = vmatmul.mubr.f32.vlgmr.msra.gmra.mxu0 %v3217_v58 }
 0x3ca   :  { %11829 = vmatmul.mubr.f32.vlgmr.msra.gmra.mxu1 %v3218_v61  ;;  %11832 = vmatpush3.msra.mxu0 %v3259_v50 }
 0x3cb   :  { %11837 = vmatpush3.msra.mxu1 %v13007_v9  ;;  %11833 = vmatprep.mubr.msk.f32.mxu0 %vm12530_vm1, %v12529_v52 }
 0x3cc   :  { %11838 = vmatprep.mubr.msk.f32.mxu1 %vm12530_vm1, %v12529_v52  ;;  %11841 = vmatprep.subr.mxu0 %v12529_v52 }
 0x3cd   :  { %11846 = vmatprep.subr.mxu1 %v12529_v52  ;;  %11834 = vmatmul.mubr.f32.vlgmr.msra.gmra.mxu0 %v3216_v54 }
 0x3ce   :  { %11839 = vmatmul.mubr.f32.vlgmr.msra.gmra.mxu1 %v3216_v54  ;;  %11842 = vmatpush3.xpose.msra.mxu0 %v13024_v56 }
 0x3cf   :  { %11847 = vmatpush3.xpose.msra.mxu1 %v3716_v45  ;;  %11843 = vmatprep.mubr.msk.f32.mxu0 %vm12530_vm1, %v12529_v52 }
 0x3d0   :  { %11848 = vmatprep.mubr.msk.f32.mxu1 %vm12530_vm1, %v12529_v52  ;;  %11851 = vmatprep.subr.mxu0 %v12529_v52 }
 0x3d1   :  { %11856 = vmatprep.subr.mxu1 %v12529_v52  ;;  %11844 = vmatmul.mubr.f32.vlgmr.msra.gmra.mxu0 %v3675_v27 }
 0x3d2   :  { %11849 = vmatmul.mubr.f32.vlgmr.msra.gmra.mxu1 %v13028_v59  ;;  %11852 = vmatpush3.xpose.msra.mxu0 %v13036_v62 }
 0x3d3   :  { %11857 = vmatpush3.xpose.msra.mxu1 %v13024_v56  ;;  %11853 = vmatprep.mubr.msk.f32.mxu0 %vm12530_vm1, %v12529_v52 }
 0x3d4   :  { %11858 = vmatprep.mubr.msk.f32.mxu1 %vm12530_vm1, %v12529_v52  ;;  %11861 = vmatprep.subr.mxu0 %v12529_v52 }
 0x3d5   :  { %11866 = vmatprep.subr.mxu1 %v12529_v52  ;;  %11854 = vmatmul.mubr.f32.vlgmr.msra.gmra.mxu0 %v3672_v14 }
 0x3d6   :  { %11859 = vmatmul.mubr.f32.vlgmr.msra.gmra.mxu1 %v3673_v20  ;;  %11862 = vmatpush3.xpose.msra.mxu0 %v3714_v17 }
 0x3d7   :  { %11867 = vmatpush3.xpose.msra.mxu1 %v13024_v56  ;;  %11863 = vmatprep.mubr.msk.f32.mxu0 %vm12530_vm1, %v12529_v52 }
 0x3d8   :  { %11868 = vmatprep.mubr.msk.f32.mxu1 %vm12530_vm1, %v12529_v52  ;;  %11871 = vmatprep.subr.mxu0 %v12529_v52 }
 0x3d9   :  { %11876 = vmatprep.subr.mxu1 %v12529_v52  ;;  %11864 = vmatmul.mubr.f32.vlgmr.msra.gmra.mxu0 %v13028_v59 }
 0x3da   :  { %11869 = vmatmul.mubr.f32.vlgmr.msra.gmra.mxu1 %v13028_v59  ;;  %11872 = vmatpush3.xpose.msra.mxu0 %v13057_v22 }
 0x3db   :  { %11877 = vmatpush3.xpose.msra.mxu1 %v4170_v34  ;;  %11873 = vmatprep.mubr.msk.f32.mxu0 %vm12530_vm1, %v12529_v52 }
 0x3dc   :  { %11878 = vmatprep.mubr.msk.f32.mxu1 %vm12530_vm1, %v12529_v52  ;;  %11881 = vmatprep.subr.mxu0 %v12529_v52 }
 0x3dd   :  { %11886 = vmatprep.subr.mxu1 %v12529_v52  ;;  %11874 = vmatmul.mubr.f32.vlgmr.msra.gmra.mxu0 %v4129_v35 }
 0x3de   :  { %11879 = vmatmul.mubr.f32.vlgmr.msra.gmra.mxu1 %v13061_v25  ;;  %11882 = vmatpush3.xpose.msra.mxu0 %v4167_v26 }
 0x3df   :  { %11887 = vmatpush3.xpose.msra.mxu1 %v13057_v22  ;;  %11883 = vmatprep.mubr.msk.f32.mxu0 %vm12530_vm1, %v12529_v52 }
 0x3e0   :  { %11888 = vmatprep.mubr.msk.f32.mxu1 %vm12530_vm1, %v12529_v52  ;;  %11891 = vmatprep.subr.mxu0 %v12529_v52 }
 0x3e1   :  { %11896 = vmatprep.subr.mxu1 %v12529_v52  ;;  %11884 = vmatmul.mubr.f32.vlgmr.msra.gmra.mxu0 %v4126_v28 }
 0x3e2   :  { %11889 = vmatmul.mubr.f32.vlgmr.msra.gmra.mxu1 %v4127_v30  ;;  %11892 = vmatpush3.xpose.msra.mxu0 %v4168_v29 }
 0x3e3   :  { %11897 = vmatpush3.xpose.msra.mxu1 %v13057_v22  ;;  %11893 = vmatprep.mubr.msk.f32.mxu0 %vm12530_vm1, %v12529_v52 }
 0x3e4   :  { %11898 = vmatprep.mubr.msk.f32.mxu1 %vm12530_vm1, %v12529_v52  ;;  %11901 = vmatprep.subr.mxu0 %v12529_v52 }
 0x3e5   :  { %11894 = vmatmul.mubr.f32.vlgmr.msra.gmra.mxu0 %v13061_v25  ;;  %11906 = vmatprep.subr.mxu1 %v12529_v52 }
 0x3e6   :  { %11899 = vmatmul.mubr.f32.vlgmr.msra.gmra.mxu1 %v13061_v25  ;;  %11903 = vmatprep.mubr.msk.f32.mxu0 %vm12530_vm1, %v12529_v52 }
 0x3e7   :  { %11908 = vmatprep.mubr.msk.f32.mxu1 %vm12530_vm1, %v12529_v52 }
 0x479   :  { %v2773_v36 = vpop.f32.mrf.mxu0  ;;  %v2849_v1 = vpop.f32.mrf.mxu1 }
 0x47a   :  { %v2850_v0 = vadd.f32 %v2849_v1, %v2773_v36 }
 0x47b   :  { %v11785_v2 = vpop.f32.mrf.mxu0  ;;  %v11790_v3 = vpop.f32.mrf.mxu1 }
 0x47d   :  { %v2923_v7 = vpop.f32.mrf.mxu0 }
 0x47e   :  { %v2924_v8 = vadd.f32 %v2923_v7, %v2850_v0  ;;  %v2997_v5 = vpop.f32.mrf.mxu1 }
 0x47f   :  { %v11795_v9 = vpop.f32.mrf.mxu0 }
 0x480   :  { %v2998_v16 = vadd.f32 %v2997_v5, %v2924_v8  ;;  %v11800_v38 = vpop.f32.mrf.mxu1 }
 0x481   :  { %v3071_v11 = vpop.f32.mrf.mxu0 }
 0x482   :  { %v3072_v39 = vadd.f32 %v3071_v11, %v2998_v16  ;;  %v3143_v40 = vpop.f32.mrf.mxu1 }
 0x483   :  { %v11805_v43 = vpop.f32.mrf.mxu0 }
 0x484   :  { %v13125_v44 = vadd.f32 %v3143_v40, %v3072_v39  ;;  %v11810_v46 = vpop.f32.mrf.mxu1 }
 0x485   :  { %v3222_v47 = vpop.f32.mrf.mxu0 }
 0x486   :  { %v3298_v48 = vpop.f32.mrf.mxu1 }
 0x487   :  { %v3299_v49 = vadd.f32 %v3298_v48, %v3222_v47  ;;  %v11815_v50 = vpop.f32.mrf.mxu0 }
 0x488   :  { %v11820_v51 = vpop.f32.mrf.mxu1 }
 0x489   :  { %v3372_v53 = vpop.f32.mrf.mxu0 }
 0x48a   :  { %v3373_v54 = vadd.f32 %v3372_v53, %v3299_v49  ;;  %v3446_v55 = vpop.f32.mrf.mxu1 }
 0x48b   :  { %v11825_v56 = vpop.f32.mrf.mxu0 }
 0x48c   :  { %v3447_v57 = vadd.f32 %v3446_v55, %v3373_v54  ;;  %v11830_v58 = vpop.f32.mrf.mxu1 }
 0x48d   :  { %v3520_v59 = vpop.f32.mrf.mxu0 }
 0x48e   :  { %v3521_v61 = vadd.f32 %v3520_v59, %v3447_v57  ;;  %v3592_v62 = vpop.f32.mrf.mxu1 }
 0x48f   :  { %v11835_v63 = vpop.f32.mrf.mxu0 }
 0x490   :  { %v13127_v10 = vadd.f32 %v3592_v62, %v3521_v61  ;;  %v11840_v12 = vpop.f32.mrf.mxu1 }
 0x491   :  { %v3677_v14 = vpop.f32.mrf.mxu0 }
 0x492   :  { %v3753_v15 = vpop.f32.mrf.mxu1 }
 0x493   :  { %v11845_v17 = vpop.f32.mrf.mxu0  ;;  %v3754_v18 = vadd.f32 %v3753_v15, %v3677_v14 }
 0x494   :  { %v11850_v19 = vpop.f32.mrf.mxu1 }
 0x495   :  { %v3827_v20 = vpop.f32.mrf.mxu0 }
 0x496   :  { %v3828_v21 = vadd.f32 %v3827_v20, %v3754_v18  ;;  %v3901_v22 = vpop.f32.mrf.mxu1 }
 0x497   :  { %v11855_v23 = vpop.f32.mrf.mxu0 }
 0x498   :  { %v3902_v24 = vadd.f32 %v3901_v22, %v3828_v21  ;;  %v11860_v25 = vpop.f32.mrf.mxu1 }
 0x499   :  { %v3975_v26 = vpop.f32.mrf.mxu0 }
 0x49a   :  { %v3976_v45 = vadd.f32 %v3975_v26, %v3902_v24  ;;  %v4047_v27 = vpop.f32.mrf.mxu1 }
 0x49b   :  { %v11865_v28 = vpop.f32.mrf.mxu0 }
 0x49c   :  { %v4048_v29 = vadd.f32 %v4047_v27, %v3976_v45  ;;  %v11870_v30 = vpop.f32.mrf.mxu1 }
 0x49d   :  { %v4131_v31 = vpop.f32.mrf.mxu0 }
 0x49e   :  { %v4207_v32 = vpop.f32.mrf.mxu1  ;;  %v4505_v34 = vsel %vm12959_vm4, -1e+09, %v4048_v29 }
 0x49f   :  { %v11875_v35 = vpop.f32.mrf.mxu0  ;;  %v4507_v36 = vsel %vm1761_vm2, %v4505_v34, -inf  ;;  %v4208_v1 = vadd.f32 %v4207_v32, %v4131_v31 }
 0x4a0   :  { %v11880_v0 = vpop.f32.mrf.mxu1  ;;  %4508 = vmax.xlane.f32.xlu0 %v4507_v36 }
 0x4a1   :  { %v4281_v2 = vpop.f32.mrf.mxu0 }
 0x4a2   :  { %v4282_v3 = vadd.f32 %v4281_v2, %v4208_v1  ;;  %v4355_v7 = vpop.f32.mrf.mxu1 }
 0x4a3   :  { %v11885_v8 = vpop.f32.mrf.mxu0 }
 0x4a4   :  { %v4356_v5 = vadd.f32 %v4355_v7, %v4282_v3  ;;  %v11890_v9 = vpop.f32.mrf.mxu1  ;;  %v5438_v3 = vld [vmem:[#allocation10 + $0x8] sm:$0xff] }
 0x4a5   :  { %v4429_v16 = vpop.f32.mrf.mxu0  ;;  %v13183_v7 = vand.u32 4294901760, %v5438_v3 }
 0x4a6   :  { %v4430_v38 = vadd.f32 %v4429_v16, %v4356_v5  ;;  %v4501_v11 = vpop.f32.mrf.mxu1 }
 0x4a7   :  { %v11895_v39 = vpop.f32.mrf.mxu0  ;;  %v13186_v8 = vsub.f32 %v5438_v3, %v13183_v7 }
 0x4a8   :  { %v4502_v40 = vadd.f32 %v4501_v11, %v4430_v38  ;;  %v11900_v43 = vpop.f32.mrf.mxu1 }
 0x4a9   :  { %v13191_v5 = vand.u32 4294901760, %v13186_v8 }
 0x4aa   :  { %v4506_v46 = vsel %vm12966_vm6, -1e+09, %v4502_v40 }
 0x4ab   :  { %v4510_v47 = vsel %vm1761_vm2, %v4506_v46, -inf  ;;  %v5565_v9 = vsub.f32 %v13186_v8, %v13191_v5 }
 0x4ac   :  { %4511 = vmax.xlane.f32.xlu1 %v4510_v47 }
 0x4ad   :  { %v5566_v16 = vand.u32 4294901760, %v5565_v9 }
 0x4bd   :  { %4533 = vrot.lane.b32.xlu1 %v12996_v6, %s12532_s3 }
 0x4c1   :  { %6431 = vrot.lane.b32.xlu1 %v12878_v42, %s12533_s19 }
 0x4c5   :  { %6429 = vrot.lane.b32.xlu1 %v12865_v13, %s12533_s19 }
 0x4c9   :  { %6883 = vrot.lane.b32.xlu1 %v12872_v33, %s12533_s19 }
 0x529   :  { %v4509_v48 = vpop.xlane.xlu0 %4508 }
 0x52a   :  { %v4513_v49 = vsub.f32 %v4505_v34, %v4509_v48 }
 0x52c   :  { %v4515_v50 = vmul.f32 1.442695, %v4513_v49 }
 0x52e   :  { %12346 = vpow2.f32 %v4515_v50 }
 0x535   :  { %v4512_v51 = vpop.xlane.xlu1 %4511 }
 0x536   :  { %v4514_v53 = vsub.f32 %v4506_v46, %v4512_v51 }
 0x538   :  { %v4517_v54 = vmul.f32 1.442695, %v4514_v53 }
 0x539   :  { %v4534_v55 = vpop.permute.xlu1 %4533 }
 0x53a   :  { %12348 = vpow2.f32 %v4517_v54  ;;  %v4570_v56 = vand.u32 4294901760, %v4534_v55 }
 0x53b   :  { %v12347_v57 = vpop.eup %12346 }
 0x53c   :  { %v4647_v58 = vsub.f32 %v4534_v55, %v4570_v56  ;;  %11902 = vmatpush3.msra.mxu0 %v4570_v56  ;;  %v4519_v59 = vsel %vm1761_vm2, %v12347_v57, 0.0 }
 0x53d   :  { %4520 = vadd.xlane.f32.xlu0 %v4519_v59  ;;  %11911 = vmatprep.subr.mxu0 %v12529_v52 }
 0x53e   :  { %v4648_v61 = vand.u32 4294901760, %v4647_v58 }
 0x540   :  { %v4649_v62 = vsub.f32 %v4647_v58, %v4648_v61 }
 0x542   :  { %v4650_v63 = vand.u32 4294901760, %v4649_v62 }
 0x544   :  { %11907 = vmatpush3.msra.mxu1 %v4650_v63 }
 0x545   :  { %11916 = vmatprep.subr.mxu1 %v12529_v52 }
 0x547   :  { %v12349_v12 = vpop.eup %12348 }
 0x548   :  { %v4522_v14 = vsel %vm1761_vm2, %v12349_v12, 0.0 }
 0x549   :  { %4523 = vadd.xlane.f32.xlu0 %v4522_v14 }
 0x55f   :  { %4986 = vrot.lane.b32.xlu0 %v12999_v4, %s12532_s3 }
 0x563   :  { %6885 = vrot.lane.b32.xlu0 %v12876_v41, %s12533_s19 }
 0x5c6   :  { %v4521_v15 = vpop.xlane.xlu0 %4520 }
 0x5c7   :  { %12350 = vrcp.f32 %v4521_v15 }
 0x5d2   :  { %v4524_v17 = vpop.xlane.xlu0 %4523 }
 0x5d3   :  { %12352 = vrcp.f32 %v4524_v17 }
 0x5d4   :  { %v12351_v18 = vpop.eup %12350 }
 0x5d5   :  { %v4527_v19 = vmul.f32 %v12351_v18, %v12347_v57 }
 0x5d6   :  { %v4987_v20 = vpop.permute.xlu0 %4986 }
 0x5d7   :  { %v5023_v21 = vand.u32 4294901760, %v4987_v20  ;;  %4530 = vst.msk [vmem:[#allocation12 + $0x8] sm:$0xff] %vm1761_vm2, %v4527_v19  ;;  %v4537_v22 = vsel %vm1761_vm2, %v4527_v19, 0 }
 0x5d8   :  { %v4605_v23 = vand.u32 4294901760, %v4537_v22 }
 0x5d9   :  { %v5100_v24 = vsub.f32 %v4987_v20, %v5023_v21 }
 0x5da   :  { %v4606_v25 = vsub.f32 %v4537_v22, %v4605_v23  ;;  %11909 = vmatmul.mubr.f32.vlgmr.msra.gmra.mxu1 %v4605_v23 }
 0x5db   :  { %v5101_v26 = vand.u32 4294901760, %v5100_v24  ;;  %11917 = vmatpush3.msra.mxu1 %v4570_v56  ;;  %11918 = vmatprep.mubr.msk.f32.mxu1 %vm12530_vm1, %v12529_v52 }
 0x5dc   :  { %11926 = vmatprep.subr.mxu1 %v12529_v52  ;;  %v4607_v45 = vand.u32 4294901760, %v4606_v25 }
 0x5dd   :  { %v5102_v27 = vsub.f32 %v5100_v24, %v5101_v26 }
 0x5de   :  { %11919 = vmatmul.mubr.f32.vlgmr.msra.gmra.mxu1 %v4607_v45  ;;  %v4608_v28 = vsub.f32 %v4606_v25, %v4607_v45 }
 0x5df   :  { %v5103_v29 = vand.u32 4294901760, %v5102_v27  ;;  %11927 = vmatpush3.msra.mxu1 %v4570_v56  ;;  %11928 = vmatprep.mubr.msk.f32.mxu1 %vm12530_vm1, %v12529_v52 }
 0x5e0   :  { %v12353_v30 = vpop.eup %12352  ;;  %11936 = vmatprep.subr.mxu1 %v12529_v52  ;;  %v4609_v31 = vand.u32 4294901760, %v4608_v28 }
 0x5e1   :  { %v4528_v32 = vmul.f32 %v12353_v30, %v12349_v12  ;;  %v3596_v12 = vld [vmem:[#allocation10] sm:$0xff] }
 0x5e2   :  { %11904 = vmatmul.mubr.f32.vlgmr.msra.gmra.mxu0 %v4609_v31  ;;  %11929 = vmatmul.mubr.f32.vlgmr.msra.gmra.mxu1 %v4605_v23 }
 0x5e3   :  { %11912 = vmatpush3.msra.mxu0 %v4647_v58  ;;  %11937 = vmatpush3.msra.mxu1 %v5103_v29  ;;  %4531 = vst.msk [vmem:[#allocation12 + $0x28] sm:$0xff] %vm1761_vm2, %v4528_v32  ;;  %v4990_v34 = vsel %vm1761_vm2, %v4528_v32, 0 }
 0x5e4   :  { %11913 = vmatprep.mubr.msk.f32.mxu0 %vm12530_vm1, %v12529_v52  ;;  %11921 = vmatprep.subr.mxu0 %v12529_v52  ;;  %v5058_v35 = vand.u32 4294901760, %v4990_v34 }
 0x5e5   :  { %11938 = vmatprep.mubr.msk.f32.mxu1 %vm12530_vm1, %v12529_v52  ;;  %11946 = vmatprep.subr.mxu1 %v12529_v52 }
 0x5e6   :  { %11914 = vmatmul.mubr.f32.vlgmr.msra.gmra.mxu0 %v4606_v25  ;;  %v5059_v36 = vsub.f32 %v4990_v34, %v5058_v35  ;;  %11939 = vmatmul.mubr.f32.vlgmr.msra.gmra.mxu1 %v5058_v35 }
 0x5e7   :  { %11922 = vmatpush3.msra.mxu0 %v4648_v61  ;;  %11947 = vmatpush3.msra.mxu1 %v5023_v21 }
 0x5e8   :  { %11923 = vmatprep.mubr.msk.f32.mxu0 %vm12530_vm1, %v12529_v52  ;;  %11931 = vmatprep.subr.mxu0 %v12529_v52  ;;  %v5060_v1 = vand.u32 4294901760, %v5059_v36 }
 0x5e9   :  { %11948 = vmatprep.mubr.msk.f32.mxu1 %vm12530_vm1, %v12529_v52  ;;  %11956 = vmatprep.subr.mxu1 %v12529_v52 }
 0x5ea   :  { %11924 = vmatmul.mubr.f32.vlgmr.msra.gmra.mxu0 %v4605_v23  ;;  %11949 = vmatmul.mubr.f32.vlgmr.msra.gmra.mxu1 %v5060_v1  ;;  %v5061_v0 = vsub.f32 %v5059_v36, %v5060_v1  ;;  %v5935_v1 = vsel %vm1761_vm2, %v13125_v44, 0 }
 0x5eb   :  { %11932 = vmatpush3.msra.mxu0 %v5023_v21  ;;  %11957 = vmatpush3.msra.mxu1 %v5023_v21  ;;  %v13200_v21 = vand.u32 4294901760, %v3596_v12 }
 0x5ec   :  { %11933 = vmatprep.mubr.msk.f32.mxu0 %vm12530_vm1, %v12529_v52  ;;  %11941 = vmatprep.subr.mxu0 %v12529_v52  ;;  %v5062_v2 = vand.u32 4294901760, %v5061_v0  ;;  %v6432_v0 = vpop.permute.xlu1 %6431 }
 0x5ed   :  { %11958 = vmatprep.mubr.msk.f32.mxu1 %vm12530_vm1, %v12529_v52  ;;  %11966 = vmatprep.subr.mxu1 %v5566_v16  ;;  %v13205_v27 = vsub.f32 %v3596_v12, %v13200_v21 }
 0x5ee   :  { %11934 = vmatmul.mubr.f32.vlgmr.msra.gmra.mxu0 %v5062_v2  ;;  %11959 = vmatmul.mubr.f32.vlgmr.msra.gmra.mxu1 %v5058_v35 }
 0x5ef   :  { %11942 = vmatpush3.msra.mxu0 %v5100_v24  ;;  %11943 = vmatprep.mubr.msk.f32.mxu0 %vm12530_vm1, %v12529_v52 }
 0x5f0   :  { %11951 = vmatprep.subr.mxu0 %v12529_v52  ;;  %11967 = vmatpush3.msra.mxu1 %v5566_v16  ;;  %v13215_v16 = vand.u32 4294901760, %v5935_v1 }
 0x5f1   :  { %11976 = vmatprep.subr.mxu1 %v13183_v7 }
 0x5f2   :  { %11944 = vmatmul.mubr.f32.vlgmr.msra.gmra.mxu0 %v5059_v36 }
 0x5f3   :  { %11952 = vmatpush3.msra.mxu0 %v5101_v26  ;;  %11953 = vmatprep.mubr.msk.f32.mxu0 %vm12530_vm1, %v12529_v52 }
 0x5f4   :  { %11961 = vmatprep.subr.mxu0 %v13183_v7 }
 0x5f6   :  { %11954 = vmatmul.mubr.f32.vlgmr.msra.gmra.mxu0 %v5058_v35  ;;  %v13208_v35 = vand.u32 4294901760, %v13205_v27 }
 0x5f7   :  { %11962 = vmatpush3.msra.mxu0 %v13183_v7 }
 0x5f8   :  { %11971 = vmatprep.subr.mxu0 %v13186_v8  ;;  %v6060_v9 = vsub.f32 %v13205_v27, %v13208_v35 }
 0x69a   :  { %v4687_v38 = vpop.f32.mrf.mxu1 }
 0x69c   :  { %v11910_v11 = vpop.f32.mrf.mxu1 }
 0x69d   :  { %v6435_v11 = vsel %vm1761_vm2, %v6432_v0, 0 }
 0x69e   :  { %v4835_v39 = vpop.f32.mrf.mxu1 }
 0x6a0   :  { %v11920_v40 = vpop.f32.mrf.mxu1 }
 0x6a2   :  { %v4611_v43 = vpop.f32.mrf.mxu0  ;;  %v4981_v46 = vpop.f32.mrf.mxu1 }
 0x6a3   :  { %v4688_v49 = vadd.f32 %v4687_v38, %v4611_v43  ;;  %v5938_v38 = vsel %vm1761_vm2, %v13127_v10, 0  ;;  %v6061_v43 = vand.u32 4294901760, %v6060_v9 }
 0x6a4   :  { %v11905_v47 = vpop.f32.mrf.mxu0  ;;  %v11930_v48 = vpop.f32.mrf.mxu1  ;;  %v13221_v44 = vand.u32 4294901760, %v5938_v38 }
 0x6a5   :  { %v13225_v47 = vand.u32 4294901760, %v6435_v11 }
 0x6a6   :  { %v4761_v50 = vpop.f32.mrf.mxu0  ;;  %v5140_v51 = vpop.f32.mrf.mxu1  ;;  %v6017_v10 = vsub.f32 %v5938_v38, %v13221_v44 }
 0x6a7   :  { %v4762_v53 = vadd.f32 %v4761_v50, %v4688_v49  ;;  %v13231_v50 = vsub.f32 %v6435_v11, %v13225_v47 }
 0x6a8   :  { %v11915_v54 = vpop.f32.mrf.mxu0  ;;  %v11940_v55 = vpop.f32.mrf.mxu1 }
 0x6a9   :  { %v4836_v56 = vadd.f32 %v4835_v39, %v4762_v53  ;;  %v6430_v53 = vpop.permute.xlu1 %6429  ;;  %v6886_v54 = vpop.permute.xlu0 %6885  ;;  %v6018_v55 = vand.u32 4294901760, %v6017_v10 }
 0x6aa   :  { %v4909_v57 = vpop.f32.mrf.mxu0  ;;  %v5288_v58 = vpop.f32.mrf.mxu1 }
 0x6ab   :  { %v4910_v59 = vadd.f32 %v4909_v57, %v4836_v56  ;;  %v6433_v56 = vsel %vm1761_vm2, %v6430_v53, 0 }
 0x6ac   :  { %v11925_v61 = vpop.f32.mrf.mxu0  ;;  %v11950_v62 = vpop.f32.mrf.mxu1 }
 0x6ad   :  { %v4982_v63 = vadd.f32 %v4981_v46, %v4910_v59  ;;  %v6007_v46 = vsub.f32 %v5935_v1, %v13215_v16  ;;  %v6019_v59 = vsub.f32 %v6017_v10, %v6018_v55 }
 0x6ae   :  { %v5064_v14 = vpop.f32.mrf.mxu0  ;;  %v5434_v15 = vpop.f32.mrf.mxu1 }
 0x6af   :  { %v5440_v17 = vsel %vm1761_vm2, %v4982_v63, 0  ;;  %v5141_v22 = vadd.f32 %v5140_v51, %v5064_v14  ;;  %v6008_v51 = vand.u32 4294901760, %v6007_v46  ;;  %v6020_v12 = vand.u32 4294901760, %v6019_v59 }
 0x6b0   :  { %v13198_v18 = vand.u32 4294901760, %v5440_v17  ;;  %v11935_v19 = vpop.f32.mrf.mxu0  ;;  %v11960_v20 = vpop.f32.mrf.mxu1 }
 0x6b1   :  { %v6009_v57 = vsub.f32 %v6007_v46, %v6008_v51 }
 0x6b2   :  { %v5512_v23 = vsub.f32 %v5440_v17, %v13198_v18  ;;  %v5214_v24 = vpop.f32.mrf.mxu0  ;;  %11968 = vmatprep.mubr.f32.mxu1 %v13198_v18  ;;  %v6884_v17 = vpop.permute.xlu1 %6883 }
 0x6b3   :  { %v5215_v25 = vadd.f32 %v5214_v24, %v5141_v22  ;;  %v6010_v63 = vand.u32 4294901760, %v6009_v57  ;;  %v6887_v19 = vsel %vm1761_vm2, %v6884_v17, 0 }
 0x6b4   :  { %v11945_v26 = vpop.f32.mrf.mxu0  ;;  %v5513_v45 = vand.u32 4294901760, %v5512_v23  ;;  %v6957_v22 = vand.u32 4294901760, %v6887_v19 }
 0x6b5   :  { %v5289_v28 = vadd.f32 %v5288_v58, %v5215_v25  ;;  %v6889_v58 = vsel %vm1761_vm2, %v6886_v54, 0 }
 0x6b6   :  { %v5362_v29 = vpop.f32.mrf.mxu0  ;;  %v5514_v30 = vsub.f32 %v5512_v23, %v5513_v45  ;;  %v13249_v62 = vand.u32 4294901760, %v6889_v58  ;;  %v6958_v25 = vsub.f32 %v6887_v19, %v6957_v22 }
 0x6b7   :  { %v5363_v31 = vadd.f32 %v5362_v29, %v5289_v28 }
 0x6b8   :  { %v11955_v32 = vpop.f32.mrf.mxu0  ;;  %v5515_v34 = vand.u32 4294901760, %v5514_v30 }
 0x6b9   :  { %v5435_v36 = vadd.f32 %v5434_v15, %v5363_v31  ;;  %v13258_v15 = vsub.f32 %v6889_v58, %v13249_v62 }
 0x6ba   :  { %11963 = vmatprep.mubr.f32.mxu0 %v5515_v34 }
 0x6bb   :  { %v5443_v2 = vsel %vm1761_vm2, %v5435_v36, 0  ;;  %v7000_v20 = vand.u32 4294901760, %v13258_v15 }
 0x6bc   :  { %v5521_v3 = vand.u32 4294901760, %v5443_v2 }
 0x6be   :  { %v5522_v39 = vsub.f32 %v5443_v2, %v5521_v3  ;;  %11969 = vmatmul.mubr.f32.vlgmr.msra.gmra.mxu1 %v5521_v3 }
 0x6bf   :  { %11978 = vmatprep.mubr.f32.mxu1 %v5513_v45  ;;  %11977 = vmatpush3.msra.mxu1 %v13183_v7  ;;  %v6959_v45 = vand.u32 4294901760, %v6958_v25 }
 0x6c0   :  { %v5523_v40 = vand.u32 4294901760, %v5522_v39  ;;  %11986 = vmatprep.subr.mxu1 %v13183_v7 }
 0x6c2   :  { %11979 = vmatmul.mubr.f32.vlgmr.msra.gmra.mxu1 %v5523_v40  ;;  %v5524_v48 = vsub.f32 %v5522_v39, %v5523_v40 }
 0x6c3   :  { %11988 = vmatprep.mubr.f32.mxu1 %v13198_v18  ;;  %11987 = vmatpush3.msra.mxu1 %v13183_v7  ;;  %v6546_v7 = vand.u32 4294901760, %v13231_v50 }
 0x6c4   :  { %v5525_v49 = vand.u32 4294901760, %v5524_v48  ;;  %11996 = vmatprep.subr.mxu1 %v6061_v43 }
 0x6c5   :  { %v6547_v61 = vsub.f32 %v13231_v50, %v6546_v7 }
 0x6c6   :  { %11964 = vmatmul.mubr.f32.vlgmr.msra.gmra.mxu0 %v5525_v49  ;;  %11989 = vmatmul.mubr.f32.vlgmr.msra.gmra.mxu1 %v5521_v3 }
 0x6c7   :  { %11972 = vmatpush3.msra.mxu0 %v13186_v8  ;;  %11973 = vmatprep.mubr.f32.mxu0 %v5512_v23  ;;  %v13243_v8 = vand.u32 4294901760, %v6433_v56  ;;  %v6548_v14 = vand.u32 4294901760, %v6547_v61  ;;  %v7001_v23 = vsub.f32 %v13258_v15, %v7000_v20 }
 0x6c8   :  { %11998 = vmatprep.mubr.f32.mxu1 %v13215_v16  ;;  %11997 = vmatpush3.msra.mxu1 %v6061_v43 }
 0x6c9   :  { %11981 = vmatprep.subr.mxu0 %v13191_v5  ;;  %12006 = vmatprep.subr.mxu1 %v13200_v21  ;;  %v7002_v26 = vand.u32 4294901760, %v7001_v23 }
 0x6ca   :  { %11974 = vmatmul.mubr.f32.vlgmr.msra.gmra.mxu0 %v5522_v39  ;;  %11999 = vmatmul.mubr.f32.vlgmr.msra.gmra.mxu1 %v13221_v44 }
 0x6cb   :  { %11982 = vmatpush3.msra.mxu0 %v13191_v5  ;;  %11983 = vmatprep.mubr.f32.mxu0 %v13198_v18  ;;  %v6504_v5 = vsub.f32 %v6433_v56, %v13243_v8 }
 0x6cc   :  { %12008 = vmatprep.mubr.f32.mxu1 %v6008_v51  ;;  %12007 = vmatpush3.msra.mxu1 %v13200_v21 }
 0x6cd   :  { %11991 = vmatprep.subr.mxu0 %v13200_v21  ;;  %12016 = vmatprep.subr.mxu1 %v13200_v21  ;;  %v6505_v18 = vand.u32 4294901760, %v6504_v5 }
 0x6ce   :  { %11984 = vmatmul.mubr.f32.vlgmr.msra.gmra.mxu0 %v5521_v3  ;;  %12009 = vmatmul.mubr.f32.vlgmr.msra.gmra.mxu1 %v6018_v55 }
 0x6cf   :  { %11992 = vmatpush3.msra.mxu0 %v13200_v21  ;;  %11993 = vmatprep.mubr.f32.mxu0 %v6010_v63 }
 0x6d0   :  { %12018 = vmatprep.mubr.f32.mxu1 %v13215_v16  ;;  %12017 = vmatpush3.msra.mxu1 %v13200_v21  ;;  %v6506_v21 = vsub.f32 %v6504_v5, %v6505_v18 }
 0x6d1   :  { %12026 = vmatprep.subr.mxu1 %v12529_v52  ;;  %12001 = vmatprep.subr.mxu0 %v13205_v27 }
 0x6d2   :  { %11994 = vmatmul.mubr.f32.vlgmr.msra.gmra.mxu0 %v6020_v12  ;;  %12019 = vmatmul.mubr.f32.vlgmr.msra.gmra.mxu1 %v13221_v44  ;;  %v6507_v24 = vand.u32 4294901760, %v6506_v21 }
 0x6d3   :  { %12027 = vmatpush3.xpose.msra.mxu1 %v6548_v14  ;;  %12002 = vmatpush3.msra.mxu0 %v13205_v27  ;;  %v6960_v27 = vsub.f32 %v6958_v25, %v6959_v45 }
 0x6d4   :  { %12003 = vmatprep.mubr.f32.mxu0 %v6007_v46  ;;  %12028 = vmatprep.mubr.msk.f32.mxu1 %vm12530_vm1, %v12529_v52 }
 0x6d5   :  { %12036 = vmatprep.subr.mxu1 %v12529_v52  ;;  %12011 = vmatprep.subr.mxu0 %v13208_v35  ;;  %v6961_v28 = vand.u32 4294901760, %v6960_v27 }
 0x6d6   :  { %12004 = vmatmul.mubr.f32.vlgmr.msra.gmra.mxu0 %v6017_v10  ;;  %12029 = vmatmul.mubr.f32.vlgmr.msra.gmra.mxu1 %v13243_v8 }
 0x6d7   :  { %12037 = vmatpush3.xpose.msra.mxu1 %v13225_v47  ;;  %12012 = vmatpush3.msra.mxu0 %v13208_v35 }
 0x6d8   :  { %12013 = vmatprep.mubr.f32.mxu0 %v13215_v16  ;;  %12021 = vmatprep.subr.mxu0 %v12529_v52 }
 0x6d9   :  { %12038 = vmatprep.mubr.msk.f32.mxu1 %vm12530_vm1, %v12529_v52  ;;  %12046 = vmatprep.subr.mxu1 %v12529_v52 }
 0x6da   :  { %12014 = vmatmul.mubr.f32.vlgmr.msra.gmra.mxu0 %v13221_v44  ;;  %12039 = vmatmul.mubr.f32.vlgmr.msra.gmra.mxu1 %v6505_v18 }
 0x6db   :  { %12022 = vmatpush3.xpose.msra.mxu0 %v13225_v47  ;;  %12047 = vmatpush3.xpose.msra.mxu1 %v13225_v47 }
 0x6dc   :  { %12023 = vmatprep.mubr.msk.f32.mxu0 %vm12530_vm1, %v12529_v52  ;;  %12031 = vmatprep.subr.mxu0 %v12529_v52 }
 0x6dd   :  { %12048 = vmatprep.mubr.msk.f32.mxu1 %vm12530_vm1, %v12529_v52  ;;  %12056 = vmatprep.subr.mxu1 %v12529_v52 }
 0x6de   :  { %12024 = vmatmul.mubr.f32.vlgmr.msra.gmra.mxu0 %v6507_v24  ;;  %12049 = vmatmul.mubr.f32.vlgmr.msra.gmra.mxu1 %v13243_v8 }
 0x6df   :  { %12032 = vmatpush3.xpose.msra.mxu0 %v13231_v50  ;;  %12057 = vmatpush3.xpose.msra.mxu1 %v7002_v26 }
 0x6e0   :  { %12033 = vmatprep.mubr.msk.f32.mxu0 %vm12530_vm1, %v12529_v52  ;;  %12041 = vmatprep.subr.mxu0 %v12529_v52 }
 0x6e1   :  { %12058 = vmatprep.mubr.msk.f32.mxu1 %vm12530_vm1, %v12529_v52  ;;  %12066 = vmatprep.subr.mxu1 %v12529_v52 }
 0x6e2   :  { %12034 = vmatmul.mubr.f32.vlgmr.msra.gmra.mxu0 %v6504_v5  ;;  %12059 = vmatmul.mubr.f32.vlgmr.msra.gmra.mxu1 %v6957_v22 }
 0x6e3   :  { %12042 = vmatpush3.xpose.msra.mxu0 %v6546_v7  ;;  %12067 = vmatpush3.xpose.msra.mxu1 %v13249_v62 }
 0x6e4   :  { %12043 = vmatprep.mubr.msk.f32.mxu0 %vm12530_vm1, %v12529_v52  ;;  %12051 = vmatprep.subr.mxu0 %v12529_v52 }
 0x6e5   :  { %12068 = vmatprep.mubr.msk.f32.mxu1 %vm12530_vm1, %v12529_v52  ;;  %12076 = vmatprep.subr.mxu1 %v12529_v52 }
 0x6e6   :  { %12044 = vmatmul.mubr.f32.vlgmr.msra.gmra.mxu0 %v13243_v8  ;;  %12069 = vmatmul.mubr.f32.vlgmr.msra.gmra.mxu1 %v6959_v45 }
 0x6e7   :  { %12052 = vmatpush3.xpose.msra.mxu0 %v13249_v62  ;;  %12077 = vmatpush3.xpose.msra.mxu1 %v13249_v62 }
 0x6e8   :  { %12053 = vmatprep.mubr.msk.f32.mxu0 %vm12530_vm1, %v12529_v52  ;;  %12061 = vmatprep.subr.mxu0 %v12529_v52 }
 0x6e9   :  { %12078 = vmatprep.mubr.msk.f32.mxu1 %vm12530_vm1, %v12529_v52  ;;  %12086 = vmatprep.subr.mxu1 %v12529_v52 }
 0x6ea   :  { %12054 = vmatmul.mubr.f32.vlgmr.msra.gmra.mxu0 %v6961_v28  ;;  %12079 = vmatmul.mubr.f32.vlgmr.msra.gmra.mxu1 %v6957_v22 }
 0x6eb   :  { %12062 = vmatpush3.xpose.msra.mxu0 %v13258_v15  ;;  %12063 = vmatprep.mubr.msk.f32.mxu0 %vm12530_vm1, %v12529_v52 }
 0x6ec   :  { %12071 = vmatprep.subr.mxu0 %v12529_v52  ;;  %12088 = vmatprep.mubr.msk.f32.mxu1 %vm12530_vm1, %v12529_v52 }
 0x6ee   :  { %12064 = vmatmul.mubr.f32.vlgmr.msra.gmra.mxu0 %v6958_v25 }
 0x6ef   :  { %12072 = vmatpush3.xpose.msra.mxu0 %v7000_v20  ;;  %12073 = vmatprep.mubr.msk.f32.mxu0 %vm12530_vm1, %v12529_v52 }
 0x6f0   :  { %12081 = vmatprep.subr.mxu0 %v12529_v52 }
 0x6f2   :  { %12074 = vmatmul.mubr.f32.vlgmr.msra.gmra.mxu0 %v6957_v22 }
 0x6f3   :  { %12083 = vmatprep.mubr.msk.f32.mxu0 %vm12530_vm1, %v12529_v52 }
 0x77e   :  { %v11970_v29 = vpop.f32.mrf.mxu1 }
 0x780   :  { %v5603_v30 = vpop.f32.mrf.mxu1 }
 0x782   :  { %v11980_v31 = vpop.f32.mrf.mxu1 }
 0x784   :  { %v5764_v32 = vpop.f32.mrf.mxu1 }
 0x786   :  { %v11965_v34 = vpop.f32.mrf.mxu0  ;;  %v11990_v35 = vpop.f32.mrf.mxu1 }
 0x787   :  { %v5610_v36 = vadd.f32 %v11970_v29, %v11965_v34 }
 0x788   :  { %v5517_v1 = vpop.f32.mrf.mxu0  ;;  %v5924_v0 = vpop.f32.mrf.mxu1 }
 0x789   :  { %v5604_v2 = vadd.f32 %v5603_v30, %v5517_v1 }
 0x78a   :  { %v11975_v3 = vpop.f32.mrf.mxu0  ;;  %v12000_v9 = vpop.f32.mrf.mxu1 }
 0x78b   :  { %v5691_v16 = vadd.f32 %v11975_v3, %v5610_v36 }
 0x78c   :  { %v5683_v38 = vpop.f32.mrf.mxu0  ;;  %v6098_v11 = vpop.f32.mrf.mxu1 }
 0x78d   :  { %v5684_v39 = vadd.f32 %v5683_v38, %v5604_v2  ;;  %v5773_v44 = vadd.f32 %v11980_v31, %v5691_v16 }
 0x78e   :  { %v11985_v40 = vpop.f32.mrf.mxu0  ;;  %v12010_v43 = vpop.f32.mrf.mxu1 }
 0x78f   :  { %v5853_v46 = vadd.f32 %v11985_v40, %v5773_v44  ;;  %v5765_v47 = vadd.f32 %v5764_v32, %v5684_v39 }
 0x790   :  { %v5846_v48 = vpop.f32.mrf.mxu0  ;;  %v6259_v10 = vpop.f32.mrf.mxu1 }
 0x791   :  { %v5847_v49 = vadd.f32 %v5846_v48, %v5765_v47  ;;  %v5931_v50 = vadd.f32 %v11990_v35, %v5853_v46 }
 0x792   :  { %v11995_v51 = vpop.f32.mrf.mxu0  ;;  %v12020_v53 = vpop.f32.mrf.mxu1 }
 0x793   :  { %v6023_v54 = vadd.f32 %v11995_v51, %v5931_v50  ;;  %v5925_v55 = vadd.f32 %v5924_v0, %v5847_v49 }
 0x794   :  { %v6012_v7 = vpop.f32.mrf.mxu0  ;;  %v6419_v56 = vpop.f32.mrf.mxu1 }
 0x795   :  { %v6013_v57 = vadd.f32 %v6012_v7, %v5925_v55  ;;  %v6105_v58 = vadd.f32 %v12000_v9, %v6023_v54 }
 0x796   :  { %v12005_v8 = vpop.f32.mrf.mxu0  ;;  %v6585_v59 = vpop.f32.mrf.mxu1 }
 0x797   :  { %v6186_v61 = vadd.f32 %v12005_v8, %v6105_v58  ;;  %v6099_v62 = vadd.f32 %v6098_v11, %v6013_v57 }
 0x798   :  { %v6178_v63 = vpop.f32.mrf.mxu0  ;;  %v12030_v5 = vpop.f32.mrf.mxu1 }
 0x799   :  { %v6179_v12 = vadd.f32 %v6178_v63, %v6099_v62  ;;  %v6268_v14 = vadd.f32 %v12010_v43, %v6186_v61 }
 0x79a   :  { %v12015_v15 = vpop.f32.mrf.mxu0  ;;  %v6733_v17 = vpop.f32.mrf.mxu1 }
 0x79b   :  { %v6348_v18 = vadd.f32 %v12015_v15, %v6268_v14  ;;  %v6260_v19 = vadd.f32 %v6259_v10, %v6179_v12 }
 0x79c   :  { %v6341_v20 = vpop.f32.mrf.mxu0  ;;  %v12040_v21 = vpop.f32.mrf.mxu1 }
 0x79d   :  { %v13325_v22 = vadd.f32 %v12020_v53, %v6348_v18  ;;  %v6342_v23 = vadd.f32 %v6341_v20, %v6260_v19 }
 0x79e   :  { %v6509_v24 = vpop.f32.mrf.mxu0  ;;  %v6879_v25 = vpop.f32.mrf.mxu1 }
 0x79f   :  { %v13327_v26 = vadd.f32 %v6419_v56, %v6342_v23  ;;  %v6586_v28 = vadd.f32 %v6585_v59, %v6509_v24 }
 0x7a0   :  { %v12025_v45 = vpop.f32.mrf.mxu0  ;;  %v12050_v27 = vpop.f32.mrf.mxu1 }
 0x7a2   :  { %v6659_v29 = vpop.f32.mrf.mxu0  ;;  %v7039_v30 = vpop.f32.mrf.mxu1 }
 0x7a3   :  { %v6660_v31 = vadd.f32 %v6659_v29, %v6586_v28 }
 0x7a4   :  { %v12035_v32 = vpop.f32.mrf.mxu0  ;;  %v12060_v34 = vpop.f32.mrf.mxu1 }
 0x7a5   :  { %v6734_v35 = vadd.f32 %v6733_v17, %v6660_v31 }
 0x7a6   :  { %v6807_v36 = vpop.f32.mrf.mxu0  ;;  %v7187_v1 = vpop.f32.mrf.mxu1 }
 0x7a7   :  { %v6808_v0 = vadd.f32 %v6807_v36, %v6734_v35 }
 0x7a8   :  { %v12045_v2 = vpop.f32.mrf.mxu0  ;;  %v12070_v3 = vpop.f32.mrf.mxu1 }
 0x7a9   :  { %v6880_v9 = vadd.f32 %v6879_v25, %v6808_v0 }
 0x7aa   :  { %v6963_v16 = vpop.f32.mrf.mxu0  ;;  %v7333_v38 = vpop.f32.mrf.mxu1 }
 0x7ab   :  { %v7337_v11 = vsel %vm12959_vm4, -1e+09, %v6880_v9  ;;  %v7040_v43 = vadd.f32 %v7039_v30, %v6963_v16  ;;  %v8268_v16 = vld [vmem:[#allocation10 + $0x10] sm:$0xff] }
 0x7ac   :  { %v12055_v39 = vpop.f32.mrf.mxu0  ;;  %v12080_v44 = vpop.f32.mrf.mxu1  ;;  %v7339_v40 = vsel %vm1761_vm2, %v7337_v11, -inf }
 0x7ad   :  { %7340 = vmax.xlane.f32.xlu0 %v7339_v40 }
 0x7ae   :  { %v7113_v46 = vpop.f32.mrf.mxu0 }
 0x7af   :  { %v7114_v47 = vadd.f32 %v7113_v46, %v7040_v43 }
 0x7b0   :  { %v12065_v48 = vpop.f32.mrf.mxu0 }
 0x7b1   :  { %v7188_v10 = vadd.f32 %v7187_v1, %v7114_v47 }
 0x7b2   :  { %v7261_v49 = vpop.f32.mrf.mxu0 }
 0x7b3   :  { %v7262_v50 = vadd.f32 %v7261_v49, %v7188_v10 }
 0x7b4   :  { %v12075_v51 = vpop.f32.mrf.mxu0 }
 0x7b5   :  { %v7334_v53 = vadd.f32 %v7333_v38, %v7262_v50  ;;  %v13383_v38 = vand.u32 4294901760, %v8268_v16 }
 0x7b7   :  { %v7338_v54 = vsel %vm12966_vm6, -1e+09, %v7334_v53 }
 0x7b8   :  { %v7342_v55 = vsel %vm1761_vm2, %v7338_v54, -inf }
 0x7b9   :  { %7343 = vmax.xlane.f32.xlu1 %v7342_v55 }
 0x7ca   :  { %7364 = vrot.lane.b32.xlu1 %v12996_v6, %s12533_s19 }
 0x7ce   :  { %8768 = vrot.lane.b32.xlu1 %v12878_v42, %s12534_s20 }
 0x7d2   :  { %8766 = vrot.lane.b32.xlu1 %v12865_v13, %s12534_s20 }
 0x7d6   :  { %9220 = vrot.lane.b32.xlu1 %v12872_v33, %s12534_s20 }
 0x836   :  { %v7341_v7 = vpop.xlane.xlu0 %7340 }
 0x837   :  { %v7345_v56 = vsub.f32 %v7337_v11, %v7341_v7  ;;  %v13386_v11 = vsub.f32 %v8268_v16, %v13383_v38 }
 0x839   :  { %v7347_v57 = vmul.f32 1.442695, %v7345_v56  ;;  %v13391_v39 = vand.u32 4294901760, %v13386_v11 }
 0x83b   :  { %12354 = vpow2.f32 %v7347_v57  ;;  %v8395_v44 = vsub.f32 %v13386_v11, %v13391_v39 }
 0x83d   :  { %v8396_v40 = vand.u32 4294901760, %v8395_v44 }
 0x842   :  { %v7344_v58 = vpop.xlane.xlu1 %7343 }
 0x843   :  { %v7346_v8 = vsub.f32 %v7338_v54, %v7344_v58 }
 0x845   :  { %v7349_v59 = vmul.f32 1.442695, %v7346_v8 }
 0x846   :  { %v7365_v61 = vpop.permute.xlu1 %7364 }
 0x847   :  { %12356 = vpow2.f32 %v7349_v59  ;;  %v7401_v62 = vand.u32 4294901760, %v7365_v61 }
 0x848   :  { %v12355_v63 = vpop.eup %12354 }
 0x849   :  { %v7478_v5 = vsub.f32 %v7365_v61, %v7401_v62  ;;  %12082 = vmatpush3.msra.mxu0 %v7401_v62  ;;  %v7351_v42 = vsel %vm1761_vm2, %v12355_v63, 0.0 }
 0x84a   :  { %7352 = vadd.xlane.f32.xlu0 %v7351_v42  ;;  %12091 = vmatprep.subr.mxu0 %v12529_v52 }
 0x84b   :  { %v7479_v13 = vand.u32 4294901760, %v7478_v5 }
 0x84d   :  { %v7480_v33 = vsub.f32 %v7478_v5, %v7479_v13 }
 0x84f   :  { %v7481_v12 = vand.u32 4294901760, %v7480_v33  ;;  %v8769_v33 = vpop.permute.xlu1 %8768 }
 0x851   :  { %12087 = vmatpush3.msra.mxu1 %v7481_v12 }
 0x852   :  { %12096 = vmatprep.subr.mxu1 %v12529_v52 }
 0x854   :  { %v12357_v14 = vpop.eup %12356 }
 0x855   :  { %v7354_v15 = vsel %vm1761_vm2, %v12357_v14, 0.0 }
 0x856   :  { %7355 = vadd.xlane.f32.xlu0 %v7354_v15 }
 0x86c   :  { %7816 = vrot.lane.b32.xlu0 %v12999_v4, %s12533_s19 }
 0x870   :  { %9222 = vrot.lane.b32.xlu0 %v12876_v41, %s12534_s20 }
 0x8d3   :  { %v7353_v17 = vpop.xlane.xlu0 %7352 }
 0x8d4   :  { %12358 = vrcp.f32 %v7353_v17 }
 0x8df   :  { %v7356_v18 = vpop.xlane.xlu0 %7355 }
 0x8e0   :  { %12360 = vrcp.f32 %v7356_v18 }
 0x8e1   :  { %v12359_v19 = vpop.eup %12358 }
 0x8e2   :  { %v7359_v20 = vmul.f32 %v12359_v19, %v12355_v63  ;;  %v8772_v19 = vsel %vm1761_vm2, %v8769_v33, 0 }
 0x8e3   :  { %v7817_v21 = vpop.permute.xlu0 %7816 }
 0x8e4   :  { %v7853_v23 = vand.u32 4294901760, %v7817_v21  ;;  %7362 = vst.msk [vmem:[#allocation12 + $0x10] sm:$0xff] %vm1761_vm2, %v7359_v20  ;;  %v7368_v24 = vsel %vm1761_vm2, %v7359_v20, 0 }
 0x8e5   :  { %v7436_v25 = vand.u32 4294901760, %v7368_v24 }
 0x8e6   :  { %v7930_v45 = vsub.f32 %v7817_v21, %v7853_v23 }
 0x8e7   :  { %v7437_v27 = vsub.f32 %v7368_v24, %v7436_v25  ;;  %12089 = vmatmul.mubr.f32.vlgmr.msra.gmra.mxu1 %v7436_v25 }
 0x8e8   :  { %v7931_v28 = vand.u32 4294901760, %v7930_v45  ;;  %12097 = vmatpush3.msra.mxu1 %v7401_v62  ;;  %12098 = vmatprep.mubr.msk.f32.mxu1 %vm12530_vm1, %v12529_v52 }
 0x8e9   :  { %12106 = vmatprep.subr.mxu1 %v12529_v52  ;;  %v7438_v41 = vand.u32 4294901760, %v7437_v27 }
 0x8ea   :  { %v7932_v29 = vsub.f32 %v7930_v45, %v7931_v28 }
 0x8eb   :  { %12099 = vmatmul.mubr.f32.vlgmr.msra.gmra.mxu1 %v7438_v41  ;;  %v7439_v30 = vsub.f32 %v7437_v27, %v7438_v41 }
 0x8ec   :  { %v7933_v31 = vand.u32 4294901760, %v7932_v29  ;;  %12107 = vmatpush3.msra.mxu1 %v7401_v62  ;;  %12108 = vmatprep.mubr.msk.f32.mxu1 %vm12530_vm1, %v12529_v52 }
 0x8ed   :  { %v12361_v32 = vpop.eup %12360  ;;  %12116 = vmatprep.subr.mxu1 %v12529_v52  ;;  %v7440_v34 = vand.u32 4294901760, %v7439_v30 }
 0x8ee   :  { %v7360_v35 = vmul.f32 %v12361_v32, %v12357_v14 }
 0x8ef   :  { %12084 = vmatmul.mubr.f32.vlgmr.msra.gmra.mxu0 %v7440_v34  ;;  %12109 = vmatmul.mubr.f32.vlgmr.msra.gmra.mxu1 %v7436_v25 }
 0x8f0   :  { %12092 = vmatpush3.msra.mxu0 %v7478_v5  ;;  %12117 = vmatpush3.msra.mxu1 %v7933_v31  ;;  %7363 = vst.msk [vmem:[#allocation12 + $0x30] sm:$0xff] %vm1761_vm2, %v7360_v35  ;;  %v7820_v36 = vsel %vm1761_vm2, %v7360_v35, 0  ;;  %v8767_v35 = vpop.permute.xlu1 %8766 }
 0x8f1   :  { %12093 = vmatprep.mubr.msk.f32.mxu0 %vm12530_vm1, %v12529_v52  ;;  %12101 = vmatprep.subr.mxu0 %v12529_v52  ;;  %v7888_v1 = vand.u32 4294901760, %v7820_v36 }
 0x8f2   :  { %12118 = vmatprep.mubr.msk.f32.mxu1 %vm12530_vm1, %v12529_v52  ;;  %12126 = vmatprep.subr.mxu1 %v12529_v52 }
 0x8f3   :  { %12094 = vmatmul.mubr.f32.vlgmr.msra.gmra.mxu0 %v7437_v27  ;;  %v7889_v0 = vsub.f32 %v7820_v36, %v7888_v1  ;;  %12119 = vmatmul.mubr.f32.vlgmr.msra.gmra.mxu1 %v7888_v1  ;;  %v9223_v36 = vpop.permute.xlu0 %9222 }
 0x8f4   :  { %12102 = vmatpush3.msra.mxu0 %v7479_v13  ;;  %12127 = vmatpush3.msra.mxu1 %v7853_v23 }
 0x8f5   :  { %12103 = vmatprep.mubr.msk.f32.mxu0 %vm12530_vm1, %v12529_v52  ;;  %12111 = vmatprep.subr.mxu0 %v12529_v52  ;;  %v7890_v2 = vand.u32 4294901760, %v7889_v0 }
 0x8f6   :  { %12128 = vmatprep.mubr.msk.f32.mxu1 %vm12530_vm1, %v12529_v52  ;;  %12136 = vmatprep.subr.mxu1 %v12529_v52 }
 0x8f7   :  { %12104 = vmatmul.mubr.f32.vlgmr.msra.gmra.mxu0 %v7436_v25  ;;  %12129 = vmatmul.mubr.f32.vlgmr.msra.gmra.mxu1 %v7890_v2  ;;  %v7891_v3 = vsub.f32 %v7889_v0, %v7890_v2 }
 0x8f8   :  { %12112 = vmatpush3.msra.mxu0 %v7853_v23  ;;  %12137 = vmatpush3.msra.mxu1 %v7853_v23 }
 0x8f9   :  { %12113 = vmatprep.mubr.msk.f32.mxu0 %vm12530_vm1, %v12529_v52  ;;  %12121 = vmatprep.subr.mxu0 %v12529_v52  ;;  %v7892_v9 = vand.u32 4294901760, %v7891_v3  ;;  %v8770_v3 = vsel %vm1761_vm2, %v8767_v35, 0 }
 0x8fa   :  { %12138 = vmatprep.mubr.msk.f32.mxu1 %vm12530_vm1, %v12529_v52  ;;  %12146 = vmatprep.subr.mxu1 %v8396_v40  ;;  %v13410_v44 = vand.u32 4294901760, %v8770_v3 }
 0x8fb   :  { %12114 = vmatmul.mubr.f32.vlgmr.msra.gmra.mxu0 %v7892_v9  ;;  %12139 = vmatmul.mubr.f32.vlgmr.msra.gmra.mxu1 %v7888_v1  ;;  %v9226_v9 = vsel %vm1761_vm2, %v9223_v36, 0 }
 0x8fc   :  { %12122 = vmatpush3.msra.mxu0 %v7930_v45  ;;  %12123 = vmatprep.mubr.msk.f32.mxu0 %vm12530_vm1, %v12529_v52  ;;  %v8805_v45 = vand.u32 4294901760, %v8772_v19 }
 0x8fd   :  { %12131 = vmatprep.subr.mxu0 %v12529_v52  ;;  %12147 = vmatpush3.msra.mxu1 %v8396_v40 }
 0x8fe   :  { %12156 = vmatprep.subr.mxu1 %v13383_v38  ;;  %v13403_v32 = vsub.f32 %v8772_v19, %v8805_v45 }
 0x8ff   :  { %12124 = vmatmul.mubr.f32.vlgmr.msra.gmra.mxu0 %v7889_v0 }
 0x900   :  { %12132 = vmatpush3.msra.mxu0 %v7931_v28  ;;  %12133 = vmatprep.mubr.msk.f32.mxu0 %vm12530_vm1, %v12529_v52  ;;  %v8883_v2 = vand.u32 4294901760, %v13403_v32 }
 0x901   :  { %12141 = vmatprep.subr.mxu0 %v13383_v38 }
 0x903   :  { %12134 = vmatmul.mubr.f32.vlgmr.msra.gmra.mxu0 %v7888_v1 }
 0x904   :  { %12142 = vmatpush3.msra.mxu0 %v13383_v38 }
 0x905   :  { %12151 = vmatprep.subr.mxu0 %v13386_v11 }
 0x9a7   :  { %v7518_v43 = vpop.f32.mrf.mxu1 }
 0x9a9   :  { %v12090_v46 = vpop.f32.mrf.mxu1 }
 0x9aa   :  { %v13416_v46 = vand.u32 4294901760, %v9226_v9 }
 0x9ab   :  { %v7666_v47 = vpop.f32.mrf.mxu1 }
 0x9ad   :  { %v12100_v48 = vpop.f32.mrf.mxu1 }
 0x9ae   :  { %v8841_v48 = vsub.f32 %v8770_v3, %v13410_v44 }
 0x9af   :  { %v7442_v10 = vpop.f32.mrf.mxu0  ;;  %v7812_v49 = vpop.f32.mrf.mxu1 }
 0x9b0   :  { %v7519_v53 = vadd.f32 %v7518_v43, %v7442_v10  ;;  %v8884_v43 = vsub.f32 %v13403_v32, %v8883_v2 }
 0x9b1   :  { %v12085_v50 = vpop.f32.mrf.mxu0  ;;  %v12110_v51 = vpop.f32.mrf.mxu1 }
 0x9b2   :  { %v13423_v50 = vsub.f32 %v9226_v9, %v13416_v46  ;;  %v9221_v51 = vpop.permute.xlu1 %9220 }
 0x9b3   :  { %v7592_v54 = vpop.f32.mrf.mxu0  ;;  %v7970_v55 = vpop.f32.mrf.mxu1 }
 0x9b4   :  { %v7593_v7 = vadd.f32 %v7592_v54, %v7519_v53  ;;  %v8842_v53 = vand.u32 4294901760, %v8841_v48  ;;  %v9337_v54 = vand.u32 4294901760, %v13423_v50 }
 0x9b5   :  { %v12095_v56 = vpop.f32.mrf.mxu0  ;;  %v12120_v57 = vpop.f32.mrf.mxu1 }
 0x9b6   :  { %v7667_v58 = vadd.f32 %v7666_v47, %v7593_v7  ;;  %v9338_v7 = vsub.f32 %v13423_v50, %v9337_v54 }
 0x9b7   :  { %v7740_v8 = vpop.f32.mrf.mxu0  ;;  %v8118_v59 = vpop.f32.mrf.mxu1 }
 0x9b8   :  { %v7741_v61 = vadd.f32 %v7740_v8, %v7667_v58 }
 0x9b9   :  { %v12105_v62 = vpop.f32.mrf.mxu0  ;;  %v12130_v63 = vpop.f32.mrf.mxu1 }
 0x9ba   :  { %v7813_v5 = vadd.f32 %v7812_v49, %v7741_v61  ;;  %v8885_v49 = vand.u32 4294901760, %v8884_v43 }
 0x9bb   :  { %v7894_v42 = vpop.f32.mrf.mxu0  ;;  %v8264_v13 = vpop.f32.mrf.mxu1 }
 0x9bc   :  { %v8270_v12 = vsel %vm1761_vm2, %v7813_v5, 0  ;;  %v7971_v18 = vadd.f32 %v7970_v55, %v7894_v42 }
 0x9bd   :  { %v13398_v14 = vand.u32 4294901760, %v8270_v12  ;;  %v12115_v15 = vpop.f32.mrf.mxu0  ;;  %v12140_v17 = vpop.f32.mrf.mxu1 }
 0x9bf   :  { %v8342_v20 = vsub.f32 %v8270_v12, %v13398_v14  ;;  %v8044_v21 = vpop.f32.mrf.mxu0  ;;  %12148 = vmatprep.mubr.f32.mxu1 %v13398_v14 }
 0x9c0   :  { %v8045_v23 = vadd.f32 %v8044_v21, %v7971_v18 }
 0x9c1   :  { %v12125_v24 = vpop.f32.mrf.mxu0  ;;  %v8343_v25 = vand.u32 4294901760, %v8342_v20 }
 0x9c2   :  { %v8119_v27 = vadd.f32 %v8118_v59, %v8045_v23 }
 0x9c3   :  { %v8192_v28 = vpop.f32.mrf.mxu0  ;;  %v8344_v41 = vsub.f32 %v8342_v20, %v8343_v25 }
 0x9c4   :  { %v8193_v29 = vadd.f32 %v8192_v28, %v8119_v27 }
 0x9c5   :  { %v12135_v30 = vpop.f32.mrf.mxu0  ;;  %v8345_v31 = vand.u32 4294901760, %v8344_v41 }
 0x9c6   :  { %v8265_v34 = vadd.f32 %v8264_v13, %v8193_v29 }
 0x9c7   :  { %12143 = vmatprep.mubr.f32.mxu0 %v8345_v31 }
 0x9c8   :  { %v8273_v1 = vsel %vm1761_vm2, %v8265_v34, 0 }
 0x9c9   :  { %v8351_v0 = vand.u32 4294901760, %v8273_v1 }
 0x9cb   :  { %v8352_v16 = vsub.f32 %v8273_v1, %v8351_v0  ;;  %12149 = vmatmul.mubr.f32.vlgmr.msra.gmra.mxu1 %v8351_v0 }
 0x9cc   :  { %12158 = vmatprep.mubr.f32.mxu1 %v8343_v25  ;;  %12157 = vmatpush3.msra.mxu1 %v13383_v38 }
 0x9cd   :  { %v8353_v40 = vand.u32 4294901760, %v8352_v16  ;;  %12166 = vmatprep.subr.mxu1 %v13383_v38 }
 0x9cf   :  { %12159 = vmatmul.mubr.f32.vlgmr.msra.gmra.mxu1 %v8353_v40  ;;  %v8354_v47 = vsub.f32 %v8352_v16, %v8353_v40 }
 0x9d0   :  { %12168 = vmatprep.mubr.f32.mxu1 %v13398_v14  ;;  %12167 = vmatpush3.msra.mxu1 %v13383_v38  ;;  %v9224_v38 = vsel %vm1761_vm2, %v9221_v51, 0 }
 0x9d1   :  { %12176 = vmatprep.subr.mxu1 %v12529_v52  ;;  %v8355_v10 = vand.u32 4294901760, %v8354_v47  ;;  %v9294_v55 = vand.u32 4294901760, %v9224_v38 }
 0x9d3   :  { %12144 = vmatmul.mubr.f32.vlgmr.msra.gmra.mxu0 %v8355_v10  ;;  %12169 = vmatmul.mubr.f32.vlgmr.msra.gmra.mxu1 %v8351_v0  ;;  %v9295_v57 = vsub.f32 %v9224_v38, %v9294_v55 }
 0x9d4   :  { %12177 = vmatpush3.xpose.msra.mxu1 %v8885_v49  ;;  %12152 = vmatpush3.msra.mxu0 %v13386_v11  ;;  %v8843_v11 = vsub.f32 %v8841_v48, %v8842_v53 }
 0x9d5   :  { %12153 = vmatprep.mubr.f32.mxu0 %v8342_v20  ;;  %12178 = vmatprep.mubr.msk.f32.mxu1 %vm12530_vm1, %v12529_v52  ;;  %v9296_v58 = vand.u32 4294901760, %v9295_v57 }
 0x9d6   :  { %12186 = vmatprep.subr.mxu1 %v12529_v52  ;;  %12161 = vmatprep.subr.mxu0 %v13391_v39  ;;  %v8844_v56 = vand.u32 4294901760, %v8843_v11 }
 0x9d7   :  { %12154 = vmatmul.mubr.f32.vlgmr.msra.gmra.mxu0 %v8352_v16  ;;  %12179 = vmatmul.mubr.f32.vlgmr.msra.gmra.mxu1 %v13410_v44  ;;  %v9297_v8 = vsub.f32 %v9295_v57, %v9296_v58 }
 0x9d8   :  { %12187 = vmatpush3.xpose.msra.mxu1 %v8805_v45  ;;  %12162 = vmatpush3.msra.mxu0 %v13391_v39  ;;  %v9339_v39 = vand.u32 4294901760, %v9338_v7 }
 0x9d9   :  { %12163 = vmatprep.mubr.f32.mxu0 %v13398_v14  ;;  %12171 = vmatprep.subr.mxu0 %v12529_v52  ;;  %v9298_v59 = vand.u32 4294901760, %v9297_v8 }
 0x9da   :  { %12188 = vmatprep.mubr.msk.f32.mxu1 %vm12530_vm1, %v12529_v52  ;;  %12196 = vmatprep.subr.mxu1 %v12529_v52 }
 0x9db   :  { %12164 = vmatmul.mubr.f32.vlgmr.msra.gmra.mxu0 %v8351_v0  ;;  %12189 = vmatmul.mubr.f32.vlgmr.msra.gmra.mxu1 %v8842_v53 }
 0x9dc   :  { %12172 = vmatpush3.xpose.msra.mxu0 %v8805_v45  ;;  %12197 = vmatpush3.xpose.msra.mxu1 %v8805_v45 }
 0x9dd   :  { %12173 = vmatprep.mubr.msk.f32.mxu0 %vm12530_vm1, %v12529_v52  ;;  %12181 = vmatprep.subr.mxu0 %v12529_v52 }
 0x9de   :  { %12198 = vmatprep.mubr.msk.f32.mxu1 %vm12530_vm1, %v12529_v52  ;;  %12206 = vmatprep.subr.mxu1 %v12529_v52 }
 0x9df   :  { %12174 = vmatmul.mubr.f32.vlgmr.msra.gmra.mxu0 %v8844_v56  ;;  %12199 = vmatmul.mubr.f32.vlgmr.msra.gmra.mxu1 %v13410_v44 }
 0x9e0   :  { %12182 = vmatpush3.xpose.msra.mxu0 %v13403_v32  ;;  %12207 = vmatpush3.xpose.msra.mxu1 %v9339_v39 }
 0x9e1   :  { %12183 = vmatprep.mubr.msk.f32.mxu0 %vm12530_vm1, %v12529_v52  ;;  %12191 = vmatprep.subr.mxu0 %v12529_v52 }
 0x9e2   :  { %12208 = vmatprep.mubr.msk.f32.mxu1 %vm12530_vm1, %v12529_v52  ;;  %12216 = vmatprep.subr.mxu1 %v12529_v52 }
 0x9e3   :  { %12184 = vmatmul.mubr.f32.vlgmr.msra.gmra.mxu0 %v8841_v48  ;;  %12209 = vmatmul.mubr.f32.vlgmr.msra.gmra.mxu1 %v9294_v55 }
 0x9e4   :  { %12192 = vmatpush3.xpose.msra.mxu0 %v8883_v2  ;;  %12217 = vmatpush3.xpose.msra.mxu1 %v13416_v46 }
 0x9e5   :  { %12193 = vmatprep.mubr.msk.f32.mxu0 %vm12530_vm1, %v12529_v52  ;;  %12201 = vmatprep.subr.mxu0 %v12529_v52 }
 0x9e6   :  { %12218 = vmatprep.mubr.msk.f32.mxu1 %vm12530_vm1, %v12529_v52  ;;  %12226 = vmatprep.subr.mxu1 %v12529_v52 }
 0x9e7   :  { %12194 = vmatmul.mubr.f32.vlgmr.msra.gmra.mxu0 %v13410_v44  ;;  %12219 = vmatmul.mubr.f32.vlgmr.msra.gmra.mxu1 %v9296_v58 }
 0x9e8   :  { %12202 = vmatpush3.xpose.msra.mxu0 %v13416_v46  ;;  %12227 = vmatpush3.xpose.msra.mxu1 %v13416_v46 }
 0x9e9   :  { %12203 = vmatprep.mubr.msk.f32.mxu0 %vm12530_vm1, %v12529_v52  ;;  %12211 = vmatprep.subr.mxu0 %v12529_v52 }
 0x9ea   :  { %12228 = vmatprep.mubr.msk.f32.mxu1 %vm12530_vm1, %v12529_v52  ;;  %12236 = vmatprep.subr.mxu1 %v12529_v52 }
 0x9eb   :  { %12204 = vmatmul.mubr.f32.vlgmr.msra.gmra.mxu0 %v9298_v59  ;;  %12229 = vmatmul.mubr.f32.vlgmr.msra.gmra.mxu1 %v9294_v55 }
 0x9ec   :  { %12212 = vmatpush3.xpose.msra.mxu0 %v13423_v50  ;;  %12213 = vmatprep.mubr.msk.f32.mxu0 %vm12530_vm1, %v12529_v52 }
 0x9ed   :  { %12221 = vmatprep.subr.mxu0 %v12529_v52  ;;  %12238 = vmatprep.mubr.msk.f32.mxu1 %vm12530_vm1, %v12529_v52 }
 0x9ef   :  { %12214 = vmatmul.mubr.f32.vlgmr.msra.gmra.mxu0 %v9295_v57 }
 0x9f0   :  { %12222 = vmatpush3.xpose.msra.mxu0 %v9337_v54  ;;  %12223 = vmatprep.mubr.msk.f32.mxu0 %vm12530_vm1, %v12529_v52 }
 0x9f1   :  { %12231 = vmatprep.subr.mxu0 %v12529_v52 }
 0x9f3   :  { %12224 = vmatmul.mubr.f32.vlgmr.msra.gmra.mxu0 %v9294_v55 }
 0x9f4   :  { %12233 = vmatprep.mubr.msk.f32.mxu0 %vm12530_vm1, %v12529_v52 }
 0xa8b   :  { %v12150_v61 = vpop.f32.mrf.mxu1 }
 0xa8d   :  { %v8433_v62 = vpop.f32.mrf.mxu1 }
 0xa8f   :  { %v12160_v63 = vpop.f32.mrf.mxu1 }
 0xa91   :  { %v8594_v5 = vpop.f32.mrf.mxu1 }
 0xa93   :  { %v12145_v42 = vpop.f32.mrf.mxu0  ;;  %v12170_v13 = vpop.f32.mrf.mxu1 }
 0xa94   :  { %v8440_v33 = vadd.f32 %v12150_v61, %v12145_v42 }
 0xa95   :  { %v8347_v12 = vpop.f32.mrf.mxu0  ;;  %v8754_v14 = vpop.f32.mrf.mxu1 }
 0xa96   :  { %v8434_v15 = vadd.f32 %v8433_v62, %v8347_v12 }
 0xa97   :  { %v12155_v17 = vpop.f32.mrf.mxu0  ;;  %v8922_v18 = vpop.f32.mrf.mxu1 }
 0xa98   :  { %v8521_v19 = vadd.f32 %v12155_v17, %v8440_v33 }
 0xa99   :  { %v8513_v20 = vpop.f32.mrf.mxu0  ;;  %v12180_v21 = vpop.f32.mrf.mxu1 }
 0xa9a   :  { %v8514_v23 = vadd.f32 %v8513_v20, %v8434_v15  ;;  %v8603_v24 = vadd.f32 %v12160_v63, %v8521_v19 }
 0xa9b   :  { %v12165_v25 = vpop.f32.mrf.mxu0  ;;  %v9070_v45 = vpop.f32.mrf.mxu1 }
 0xa9c   :  { %v8683_v27 = vadd.f32 %v12165_v25, %v8603_v24  ;;  %v8595_v28 = vadd.f32 %v8594_v5, %v8514_v23 }
 0xa9d   :  { %v8676_v41 = vpop.f32.mrf.mxu0  ;;  %v12190_v29 = vpop.f32.mrf.mxu1 }
 0xa9e   :  { %v8761_v30 = vadd.f32 %v12170_v13, %v8683_v27  ;;  %v8677_v31 = vadd.f32 %v8676_v41, %v8595_v28 }
 0xa9f   :  { %v8846_v32 = vpop.f32.mrf.mxu0  ;;  %v9216_v34 = vpop.f32.mrf.mxu1 }
 0xaa0   :  { %v13484_v35 = vadd.f32 %v8761_v30, %v13325_v22  ;;  %v8755_v36 = vadd.f32 %v8754_v14, %v8677_v31  ;;  %v8923_v3 = vadd.f32 %v8922_v18, %v8846_v32 }
 0xaa1   :  { %v12175_v1 = vpop.f32.mrf.mxu0  ;;  %v12200_v0 = vpop.f32.mrf.mxu1 }
 0xaa2   :  { %v13487_v2 = vadd.f32 %v8755_v36, %v13327_v26 }
 0xaa3   :  { %v8996_v9 = vpop.f32.mrf.mxu0  ;;  %v9376_v16 = vpop.f32.mrf.mxu1 }
 0xaa4   :  { %v8997_v44 = vadd.f32 %v8996_v9, %v8923_v3 }
 0xaa5   :  { %v12185_v40 = vpop.f32.mrf.mxu0  ;;  %v12210_v43 = vpop.f32.mrf.mxu1 }
 0xaa6   :  { %v9071_v46 = vadd.f32 %v9070_v45, %v8997_v44 }
 0xaa7   :  { %v9144_v47 = vpop.f32.mrf.mxu0  ;;  %v9524_v48 = vpop.f32.mrf.mxu1 }
 0xaa8   :  { %v9145_v10 = vadd.f32 %v9144_v47, %v9071_v46 }
 0xaa9   :  { %v12195_v49 = vpop.f32.mrf.mxu0  ;;  %v12220_v50 = vpop.f32.mrf.mxu1 }
 0xaaa   :  { %v9217_v22 = vadd.f32 %v9216_v34, %v9145_v10  ;;  %v10605_v10 = vld [vmem:[#allocation10 + $0x18] sm:$0xff] }
 0xaab   :  { %v9300_v51 = vpop.f32.mrf.mxu0  ;;  %v9670_v53 = vpop.f32.mrf.mxu1  ;;  %v13535_v49 = vand.u32 4294901760, %v10605_v10 }
 0xaac   :  { %v9674_v38 = vsel %vm12959_vm4, -1e+09, %v9217_v22  ;;  %v9377_v55 = vadd.f32 %v9376_v16, %v9300_v51 }
 0xaad   :  { %v12205_v26 = vpop.f32.mrf.mxu0  ;;  %v12230_v54 = vpop.f32.mrf.mxu1  ;;  %v9676_v11 = vsel %vm1761_vm2, %v9674_v38, -inf  ;;  %v13538_v50 = vsub.f32 %v10605_v10, %v13535_v49 }
 0xaae   :  { %9677 = vmax.xlane.f32.xlu0 %v9676_v11 }
 0xaaf   :  { %v9450_v7 = vpop.f32.mrf.mxu0  ;;  %v13543_v22 = vand.u32 4294901760, %v13538_v50 }
 0xab0   :  { %v9451_v56 = vadd.f32 %v9450_v7, %v9377_v55 }
 0xab1   :  { %v12215_v57 = vpop.f32.mrf.mxu0  ;;  %v10732_v51 = vsub.f32 %v13538_v50, %v13543_v22 }
 0xab2   :  { %v9525_v39 = vadd.f32 %v9524_v48, %v9451_v56 }
 0xab3   :  { %v9598_v58 = vpop.f32.mrf.mxu0 }
 0xab4   :  { %v9599_v8 = vadd.f32 %v9598_v58, %v9525_v39 }
 0xab5   :  { %v12225_v59 = vpop.f32.mrf.mxu0 }
 0xab6   :  { %v9671_v61 = vadd.f32 %v9670_v53, %v9599_v8 }
 0xab8   :  { %v9675_v62 = vsel %vm12966_vm6, -1e+09, %v9671_v61 }
 0xab9   :  { %v9679_v37 = vsel %vm1761_vm2, %v9675_v62, -inf }
 0xaba   :  { %9680 = vmax.xlane.f32.xlu1 %v9679_v37 }
 0xacb   :  { %9701 = vrot.lane.b32.xlu1 %v12996_v6, %s12534_s20 }
 0xb37   :  { %v9678_v63 = vpop.xlane.xlu0 %9677 }
 0xb38   :  { %v9682_v5 = vsub.f32 %v9674_v38, %v9678_v63 }
 0xb3a   :  { %v9684_v42 = vmul.f32 1.442695, %v9682_v5 }
 0xb3c   :  { %12362 = vpow2.f32 %v9684_v42 }
 0xb43   :  { %v9681_v13 = vpop.xlane.xlu1 %9680 }
 0xb44   :  { %v9683_v33 = vsub.f32 %v9675_v62, %v9681_v13 }
 0xb46   :  { %v9686_v12 = vmul.f32 1.442695, %v9683_v33 }
 0xb47   :  { %v9702_v14 = vpop.permute.xlu1 %9701 }
 0xb48   :  { %12364 = vpow2.f32 %v9686_v12  ;;  %v9738_v15 = vand.u32 4294901760, %v9702_v14 }
 0xb49   :  { %v12363_v17 = vpop.eup %12362 }
 0xb4a   :  { %v9815_v18 = vsub.f32 %v9702_v14, %v9738_v15  ;;  %12232 = vmatpush3.msra.mxu0 %v9738_v15  ;;  %v9688_v60 = vsel %vm1761_vm2, %v12363_v17, 0.0 }
 0xb4b   :  { %9689 = vadd.xlane.f32.xlu0 %v9688_v60  ;;  %12241 = vmatprep.subr.mxu0 %v12529_v52 }
 0xb4c   :  { %v9816_v19 = vand.u32 4294901760, %v9815_v18 }
 0xb4e   :  { %v9817_v6 = vsub.f32 %v9815_v18, %v9816_v19 }
 0xb50   :  { %v9818_v20 = vand.u32 4294901760, %v9817_v6 }
 0xb52   :  { %12237 = vmatpush3.msra.mxu1 %v9818_v20 }
 0xb53   :  { %12246 = vmatprep.subr.mxu1 %v12529_v52 }
 0xb55   :  { %v12365_v21 = vpop.eup %12364 }
 0xb56   :  { %v9691_v23 = vsel %vm1761_vm2, %v12365_v21, 0.0 }
 0xb57   :  { %9692 = vadd.xlane.f32.xlu0 %v9691_v23 }
 0xb6d   :  { %10153 = vrot.lane.b32.xlu0 %v12999_v4, %s12534_s20 }
 0xbd4   :  { %v9690_v24 = vpop.xlane.xlu0 %9689 }
 0xbd5   :  { %12366 = vrcp.f32 %v9690_v24 }
 0xbe0   :  { %v9693_v25 = vpop.xlane.xlu0 %9692 }
 0xbe1   :  { %12368 = vrcp.f32 %v9693_v25 }
 0xbe2   :  { %v12367_v45 = vpop.eup %12366 }
 0xbe3   :  { %v9696_v27 = vmul.f32 %v12367_v45, %v12363_v17 }
 0xbe4   :  { %v10154_v28 = vpop.permute.xlu0 %10153 }
 0xbe5   :  { %9699 = vst.msk [vmem:[#allocation12 + $0x18] sm:$0xff] %vm1761_vm2, %v9696_v27  ;;  %v10190_v41 = vand.u32 4294901760, %v10154_v28  ;;  %v9705_v29 = vsel %vm1761_vm2, %v9696_v27, 0 }
 0xbe6   :  { %v9773_v30 = vand.u32 4294901760, %v9705_v29 }
 0xbe7   :  { %v10267_v31 = vsub.f32 %v10154_v28, %v10190_v41 }
 0xbe8   :  { %v9774_v32 = vsub.f32 %v9705_v29, %v9773_v30  ;;  %12239 = vmatmul.mubr.f32.vlgmr.msra.gmra.mxu1 %v9773_v30 }
 0xbe9   :  { %v10268_v34 = vand.u32 4294901760, %v10267_v31  ;;  %12247 = vmatpush3.msra.mxu1 %v9738_v15  ;;  %12248 = vmatprep.mubr.msk.f32.mxu1 %vm12530_vm1, %v12529_v52 }
 0xbea   :  { %12256 = vmatprep.subr.mxu1 %v12529_v52  ;;  %v9775_v4 = vand.u32 4294901760, %v9774_v32 }
 0xbeb   :  { %v10269_v36 = vsub.f32 %v10267_v31, %v10268_v34 }
 0xbec   :  { %12249 = vmatmul.mubr.f32.vlgmr.msra.gmra.mxu1 %v9775_v4  ;;  %v9776_v1 = vsub.f32 %v9774_v32, %v9775_v4 }
 0xbed   :  { %v10270_v0 = vand.u32 4294901760, %v10269_v36  ;;  %12257 = vmatpush3.msra.mxu1 %v9738_v15  ;;  %12258 = vmatprep.mubr.msk.f32.mxu1 %vm12530_vm1, %v12529_v52 }
 0xbee   :  { %v12369_v3 = vpop.eup %12368  ;;  %12266 = vmatprep.subr.mxu1 %v12529_v52  ;;  %v9777_v9 = vand.u32 4294901760, %v9776_v1 }
 0xbef   :  { %v9697_v16 = vmul.f32 %v12369_v3, %v12365_v21 }
 0xbf0   :  { %12234 = vmatmul.mubr.f32.vlgmr.msra.gmra.mxu0 %v9777_v9  ;;  %12259 = vmatmul.mubr.f32.vlgmr.msra.gmra.mxu1 %v9773_v30 }
 0xbf1   :  { %9700 = vst.msk [vmem:[#allocation12 + $0x38] sm:$0xff] %vm1761_vm2, %v9697_v16  ;;  %12242 = vmatpush3.msra.mxu0 %v9815_v18  ;;  %12267 = vmatpush3.msra.mxu1 %v10270_v0  ;;  %v10157_v44 = vsel %vm1761_vm2, %v9697_v16, 0 }
 0xbf2   :  { %12243 = vmatprep.mubr.msk.f32.mxu0 %vm12530_vm1, %v12529_v52  ;;  %12251 = vmatprep.subr.mxu0 %v12529_v52  ;;  %v10225_v40 = vand.u32 4294901760, %v10157_v44 }
 0xbf3   :  { %12268 = vmatprep.mubr.msk.f32.mxu1 %vm12530_vm1, %v12529_v52  ;;  %12276 = vmatprep.subr.mxu1 %v12529_v52 }
 0xbf4   :  { %12244 = vmatmul.mubr.f32.vlgmr.msra.gmra.mxu0 %v9774_v32  ;;  %v10226_v43 = vsub.f32 %v10157_v44, %v10225_v40  ;;  %12269 = vmatmul.mubr.f32.vlgmr.msra.gmra.mxu1 %v10225_v40 }
 0xbf5   :  { %12252 = vmatpush3.msra.mxu0 %v9816_v19  ;;  %12277 = vmatpush3.msra.mxu1 %v10190_v41 }
 0xbf6   :  { %12253 = vmatprep.mubr.msk.f32.mxu0 %vm12530_vm1, %v12529_v52  ;;  %12261 = vmatprep.subr.mxu0 %v12529_v52  ;;  %v10227_v46 = vand.u32 4294901760, %v10226_v43 }
 0xbf7   :  { %12278 = vmatprep.mubr.msk.f32.mxu1 %vm12530_vm1, %v12529_v52  ;;  %12286 = vmatprep.subr.mxu1 %v12529_v52 }
 0xbf8   :  { %12254 = vmatmul.mubr.f32.vlgmr.msra.gmra.mxu0 %v9773_v30  ;;  %12279 = vmatmul.mubr.f32.vlgmr.msra.gmra.mxu1 %v10227_v46  ;;  %v10228_v47 = vsub.f32 %v10226_v43, %v10227_v46 }
 0xbf9   :  { %12262 = vmatpush3.msra.mxu0 %v10190_v41  ;;  %12287 = vmatpush3.msra.mxu1 %v10190_v41 }
 0xbfa   :  { %12263 = vmatprep.mubr.msk.f32.mxu0 %vm12530_vm1, %v12529_v52  ;;  %12271 = vmatprep.subr.mxu0 %v12529_v52  ;;  %v10229_v48 = vand.u32 4294901760, %v10228_v47 }
 0xbfb   :  { %12288 = vmatprep.mubr.msk.f32.mxu1 %vm12530_vm1, %v12529_v52 }
 0xbfc   :  { %12264 = vmatmul.mubr.f32.vlgmr.msra.gmra.mxu0 %v10229_v48  ;;  %12289 = vmatmul.mubr.f32.vlgmr.msra.gmra.mxu1 %v10225_v40 }
 0xbfd   :  { %12272 = vmatpush3.msra.mxu0 %v10267_v31  ;;  %12273 = vmatprep.mubr.msk.f32.mxu0 %vm12530_vm1, %v12529_v52 }
 0xbfe   :  { %12281 = vmatprep.subr.mxu0 %v12529_v52 }
 0xc00   :  { %12274 = vmatmul.mubr.f32.vlgmr.msra.gmra.mxu0 %v10226_v43 }
 0xc01   :  { %12282 = vmatpush3.msra.mxu0 %v10268_v34  ;;  %12283 = vmatprep.mubr.msk.f32.mxu0 %vm12530_vm1, %v12529_v52  ;;  %v10733_v52 = vand.u32 4294901760, %v10732_v51 }
 0xc02   :  { %12291 = vmatprep.subr.mxu0 %v13535_v49 }
 0xc03   :  { %12296 = vmatprep.subr.mxu1 %v10733_v52 }
 0xc04   :  { %12284 = vmatmul.mubr.f32.vlgmr.msra.gmra.mxu0 %v10225_v40  ;;  %12297 = vmatpush3.msra.mxu1 %v10733_v52 }
 0xc05   :  { %12292 = vmatpush3.msra.mxu0 %v13535_v49  ;;  %12306 = vmatprep.subr.mxu1 %v13535_v49 }
 0xc06   :  { %12301 = vmatprep.subr.mxu0 %v13538_v50 }
 0xca8   :  { %v9855_v53 = vpop.f32.mrf.mxu1 }
 0xcaa   :  { %v12240_v38 = vpop.f32.mrf.mxu1 }
 0xcac   :  { %v10003_v26 = vpop.f32.mrf.mxu1 }
 0xcae   :  { %v12250_v54 = vpop.f32.mrf.mxu1 }
 0xcb0   :  { %v9779_v11 = vpop.f32.mrf.mxu0  ;;  %v10149_v55 = vpop.f32.mrf.mxu1 }
 0xcb1   :  { %v9856_v57 = vadd.f32 %v9855_v53, %v9779_v11 }
 0xcb2   :  { %v12235_v7 = vpop.f32.mrf.mxu0  ;;  %v12260_v56 = vpop.f32.mrf.mxu1 }
 0xcb4   :  { %v9929_v39 = vpop.f32.mrf.mxu0  ;;  %v10307_v58 = vpop.f32.mrf.mxu1 }
 0xcb5   :  { %v9930_v8 = vadd.f32 %v9929_v39, %v9856_v57 }
 0xcb6   :  { %v12245_v59 = vpop.f32.mrf.mxu0  ;;  %v12270_v61 = vpop.f32.mrf.mxu1 }
 0xcb7   :  { %v10004_v62 = vadd.f32 %v10003_v26, %v9930_v8 }
 0xcb8   :  { %v10077_v37 = vpop.f32.mrf.mxu0  ;;  %v10455_v63 = vpop.f32.mrf.mxu1 }
 0xcb9   :  { %v10078_v5 = vadd.f32 %v10077_v37, %v10004_v62 }
 0xcba   :  { %v12255_v42 = vpop.f32.mrf.mxu0  ;;  %v12280_v13 = vpop.f32.mrf.mxu1 }
 0xcbb   :  { %v10150_v33 = vadd.f32 %v10149_v55, %v10078_v5 }
 0xcbc   :  { %v10231_v12 = vpop.f32.mrf.mxu0  ;;  %v10601_v14 = vpop.f32.mrf.mxu1 }
 0xcbd   :  { %v10607_v15 = vsel %vm1761_vm2, %v10150_v33, 0  ;;  %v10308_v19 = vadd.f32 %v10307_v58, %v10231_v12 }
 0xcbe   :  { %v10678_v17 = vand.u32 4294901760, %v10607_v15  ;;  %v12265_v18 = vpop.f32.mrf.mxu0  ;;  %v12290_v60 = vpop.f32.mrf.mxu1 }
 0xcc0   :  { %v10679_v6 = vsub.f32 %v10607_v15, %v10678_v17  ;;  %v10381_v20 = vpop.f32.mrf.mxu0  ;;  %12298 = vmatprep.mubr.f32.mxu1 %v10678_v17 }
 0xcc1   :  { %v10382_v21 = vadd.f32 %v10381_v20, %v10308_v19 }
 0xcc2   :  { %v12275_v23 = vpop.f32.mrf.mxu0  ;;  %v10680_v24 = vand.u32 4294901760, %v10679_v6 }
 0xcc3   :  { %v10456_v25 = vadd.f32 %v10455_v63, %v10382_v21 }
 0xcc4   :  { %v10529_v45 = vpop.f32.mrf.mxu0  ;;  %v10681_v27 = vsub.f32 %v10679_v6, %v10680_v24 }
 0xcc5   :  { %v10530_v28 = vadd.f32 %v10529_v45, %v10456_v25 }
 0xcc6   :  { %v12285_v41 = vpop.f32.mrf.mxu0  ;;  %v10682_v29 = vand.u32 4294901760, %v10681_v27 }
 0xcc7   :  { %v10602_v30 = vadd.f32 %v10601_v14, %v10530_v28 }
 0xcc8   :  { %12293 = vmatprep.mubr.f32.mxu0 %v10682_v29 }
 0xcc9   :  { %v10610_v31 = vsel %vm1761_vm2, %v10602_v30, 0 }
 0xcca   :  { %v10688_v32 = vand.u32 4294901760, %v10610_v31 }
 0xccc   :  { %v10689_v34 = vsub.f32 %v10610_v31, %v10688_v32  ;;  %12299 = vmatmul.mubr.f32.vlgmr.msra.gmra.mxu1 %v10688_v32 }
 0xccd   :  { %12308 = vmatprep.mubr.f32.mxu1 %v10680_v24  ;;  %12307 = vmatpush3.msra.mxu1 %v13535_v49 }
 0xcce   :  { %v10690_v4 = vand.u32 4294901760, %v10689_v34  ;;  %12316 = vmatprep.subr.mxu1 %v13535_v49 }
 0xcd0   :  { %v10691_v36 = vsub.f32 %v10689_v34, %v10690_v4  ;;  %12309 = vmatmul.mubr.f32.vlgmr.msra.gmra.mxu1 %v10690_v4 }
 0xcd1   :  { %12318 = vmatprep.mubr.f32.mxu1 %v10678_v17  ;;  %12317 = vmatpush3.msra.mxu1 %v13535_v49 }
 0xcd2   :  { %v10692_v1 = vand.u32 4294901760, %v10691_v36 }
 0xcd4   :  { %12294 = vmatmul.mubr.f32.vlgmr.msra.gmra.mxu0 %v10692_v1  ;;  %12319 = vmatmul.mubr.f32.vlgmr.msra.gmra.mxu1 %v10688_v32 }
 0xcd5   :  { %12302 = vmatpush3.msra.mxu0 %v13538_v50  ;;  %12303 = vmatprep.mubr.f32.mxu0 %v10679_v6 }
 0xcd6   :  { %12311 = vmatprep.subr.mxu0 %v13543_v22 }
 0xcd8   :  { %12304 = vmatmul.mubr.f32.vlgmr.msra.gmra.mxu0 %v10689_v34 }
 0xcd9   :  { %12312 = vmatpush3.msra.mxu0 %v13543_v22  ;;  %12313 = vmatprep.mubr.f32.mxu0 %v10678_v17 }
 0xcdc   :  { %12314 = vmatmul.mubr.f32.vlgmr.msra.gmra.mxu0 %v10688_v32 }
 0xcdd   :  { %12481 = shalt.err (!%p12478_p1)
}
 0xcde   :  { %11137 = dma.vmem_to_hbm [thread:$0]  %s11132_s22, 1024, %s13585_s9, [#allocation13], %s12522_s14, %s12522_s14, %s12523_s15  }
 0xcdf   :  { %v11150_v55 = vld [vmem:[%s13583_s7] ss:$0 sm:$0xff]  ;;  %s12536_s26 = smov [#allocation11]  }
 0xce0   :  { %s11119_s4 = sshll.u32 %s12536_s26, 4  ;;  %s11120_s4 = int_to_ptr.vmem [resolvable:$true] %s11119_s4 }
 0xce1   :  { %s12490_s27 = scalar_lea.vmem %s11120_s4, 256  ;;  %p12495_p3 = scmp.lt.s32.totalorder %s11120_s4, %s11120_s4 }
 0xce2   :  { %p12491_p2 = scmp.ne.s32.totalorder %s11120_s4, %s12490_s27  ;;  %p12496_p4 = scmp.lt.s32.totalorder %s12490_s27, %s12490_s27 }
 0xce4   :  { %p12497_p5 = por %p12496_p4, %p12495_p3 }
 0xce6   :  { %p12498_p6 = pnand %p12497_p5, %p12491_p2 }
 0xd8c   :  { %v12300_v0 = vpop.f32.mrf.mxu1 }
 0xd8e   :  { %v10770_v3 = vpop.f32.mrf.mxu1 }
 0xd90   :  { %v12310_v9 = vpop.f32.mrf.mxu1 }
 0xd92   :  { %v10931_v43 = vpop.f32.mrf.mxu1 }
 0xd94   :  { %v12295_v16 = vpop.f32.mrf.mxu0  ;;  %v12320_v22 = vpop.f32.mrf.mxu1 }
 0xd95   :  { %v10777_v40 = vadd.f32 %v12300_v0, %v12295_v16 }
 0xd96   :  { %v10684_v44 = vpop.f32.mrf.mxu0  ;;  %v11091_v11 = vpop.f32.mrf.mxu1 }
 0xd97   :  { %v10771_v47 = vadd.f32 %v10770_v3, %v10684_v44 }
 0xd98   :  { %v12305_v46 = vpop.f32.mrf.mxu0 }
 0xd99   :  { %v10858_v48 = vadd.f32 %v12305_v46, %v10777_v40 }
 0xd9a   :  { %v10850_v10 = vpop.f32.mrf.mxu0 }
 0xd9b   :  { %v10851_v49 = vadd.f32 %v10850_v10, %v10771_v47  ;;  %v10940_v50 = vadd.f32 %v12310_v9, %v10858_v48 }
 0xd9c   :  { %v12315_v51 = vpop.f32.mrf.mxu0 }
 0xd9d   :  { %v11020_v52 = vadd.f32 %v12315_v51, %v10940_v50  ;;  %v10932_v53 = vadd.f32 %v10931_v43, %v10851_v49 }
 0xd9e   :  { %v11013_v38 = vpop.f32.mrf.mxu0 }
 0xd9f   :  { %v11098_v26 = vadd.f32 %v12320_v22, %v11020_v52  ;;  %v11014_v54 = vadd.f32 %v11013_v38, %v10932_v53 }
 0xda1   :  { %v11102_v7 = vadd.f32 %v11098_v26, %v13484_v35  ;;  %v11092_v56 = vadd.f32 %v11091_v11, %v11014_v54 }
 0xda3   :  { %v11111_v57 = vadd.f32 %v11150_v55, %v11102_v7  ;;  %v11101_v39 = vadd.f32 %v11092_v56, %v13487_v2 }
 0xda5   :  { %11113 = vst.msk [vmem:[#allocation11 + $0x8] sm:$0xff] %vm116_vm0, %v11111_v57  ;;  %v11110_v58 = vadd.f32 %v11150_v55, %v11101_v39 }
 0xda7   :  { %11112 = vst.msk [vmem:[#allocation11] sm:$0xff] %vm116_vm0, %v11110_v58 }
 0xda8   :  { %12501 = shalt.err (!%p12498_p6)
}
 0xda9   :  { %11125 = dma.vmem_to_hbm [thread:$0]  %s11120_s4, 256, %s13584_s8, [#allocation4], %s12522_s14, %s12522_s14, %s12523_s15  }
 0xdaa   :  { %12516 = dma.done.wait [#allocation4], 256  }
 0xdab   :  { %12517 = vsyncadd [#allocation4], 4294967040 }
 0xdac   :  { %12518 = dma.done.wait [#allocation13], 1024  }
 0xdad   :  { %12519 = vsyncadd [#allocation13], 4294966272 }
 0xdae   :  { %11144 = vsyncpa [#allocation3], 1 }
 0xdaf   :  { %11145 = vsyncpa [#allocation6], 1 }
 0xdb0   :  { %11146 = vsyncpa [#allocation9], 1 }
 0xdb1   :  { %11147 = vsyncpa [#allocation4], 1 }
 0xdb2   :  { %11148 = vsyncpa [#allocation13], 1 }

</bundles_post_ra>
